<compile_context>
chip_gen: v5e
topology: v5e:2x2
jax: 0.10.0
libtpu: 0.0.40
codegen_flags: <defaults>
</compile_context>

<pallas_src>
import functools

import jax
import jax.numpy as jnp
import numpy as np
from jax import lax
from jax.experimental import pallas as pl
from jax.experimental.pallas import tpu as pltpu


# ---------------------------------------------------------------- kernel -----

def _layer_norm(x, gamma, beta, eps=1e-6):
    # nn.LayerNorm(d_model, eps=1e-6): biased variance over last dim, f32 stats.
    mean = jnp.mean(x, axis=-1, keepdims=True)
    var = jnp.mean((x - mean) ** 2, axis=-1, keepdims=True)
    return (x - mean) * lax.rsqrt(var + eps) * gamma + beta


def decoder_kernel(n_layers, n_head, d_k, d_v,
                   x_ref, pos_ref, enc_ref, tmask_ref, smask_ref,
                   ln0_g_ref, ln0_b_ref,
                   wsa_qkv_ref, wsa_o_ref, wca_q_ref, wca_kv_ref, wca_o_ref,
                   lng_ref, lnb_ref, w1_ref, b1_ref, w2_ref, b2_ref,
                   o_ref):
    # wsa_qkv_ref : (L, D, 3*H*d_k)  fused [Q|K|V] self-attn projections (bf16,
    #                                 1/sqrt(d_k) already folded into the Q part)
    # wca_q_ref   : (L, D, H*d_k)    cross-attn Q (scaled), wca_kv_ref: (L, D, 2*H*d_k)
    # wsa_o_ref / wca_o_ref : (L, H*d_v, D)  output projections (bf16)
    # lng_ref / lnb_ref     : (L, 3, D)      per-sublayer LayerNorm params (f32)
    H, dk, dv = n_head, d_k, d_v
    TB, S, D = x_ref.shape
    S_src = enc_ref.shape[1]

    # --- decoder input: embedding + pos-enc + dropout(identity) + LayerNorm ---
    x = x_ref[...] + pos_ref[...][None, :, :]                        # (TB, S, D)
    x = _layer_norm(x.reshape(TB * S, D), ln0_g_ref[...], ln0_b_ref[...])

    enc_bf = enc_ref[...].reshape(TB * S_src, D).astype(jnp.bfloat16)
    # additive masks computed ONCE per grid step (0 keep / -1e9 drop)
    tmask_add = jnp.where(tmask_ref[...] > 0.0, 0.0, -1e9)           # (TB, S, S)
    smask_add = jnp.where(smask_ref[...] > 0.0, 0.0, -1e9)           # (TB, 1, S_src)

    def attention(q_all, kv_all, mask_add, wo, s_k):
        # q_all  : (TB*S, H*dk) f32       kv_all : (TB*s_k, 2*H*dk) f32
        # mask_add : (TB, *, s_k) additive, wo : (H*dv, D) bf16
        outs = []
        for b in range(TB):                          # static; attention is per-sample
            q_b = q_all[b * S:(b + 1) * S]
            kv_b = kv_all[b * s_k:(b + 1) * s_k]
            m_b = mask_add[b]
            heads = []
            for h in range(H):                       # heads sliced only for score/PV
                qh = q_b[:, h * dk:(h + 1) * dk].astype(jnp.bfloat16)
                kh = kv_b[:, h * dk:(h + 1) * dk].astype(jnp.bfloat16)
                vh = kv_b[:, H * dk + h * dv:H * dk + (h + 1) * dv].astype(jnp.bfloat16)
                # scores without materializing kh.T (contract last axes)
                s = lax.dot_general(qh, kh, (((1,), (1,)), ((), ())),
                                    preferred_element_type=jnp.float32)  # (S, s_k)
                s = s + m_b
                s = s - jnp.max(s, axis=-1, keepdims=True)
                p = jnp.exp(s)
                p = p / jnp.sum(p, axis=-1, keepdims=True)   # exact divide (parity)
                heads.append(jnp.dot(p.astype(jnp.bfloat16), vh,
                                     preferred_element_type=jnp.float32))  # (S, dv)
            hcat = jnp.concatenate(heads, axis=-1)                     # (S, H*dv)
            outs.append(jnp.dot(hcat.astype(jnp.bfloat16), wo,
                                preferred_element_type=jnp.float32))   # (S, D)
        return jnp.concatenate(outs, axis=0)                           # (TB*S, D)

    # TODO(synk): DecoderLayer source not given; assumes standard post-LN layer
    # (self-attn masked by tgt_mask, cross-attn over enc_output masked by src_mask).
    def layer_body(l, x):
        lg = lng_ref[l]                                                # (3, D)
        lb = lnb_ref[l]

        # --- masked self-attention (one fused [Q|K|V] matmul) ---
        x_bf = x.astype(jnp.bfloat16)
        qkv = jnp.dot(x_bf, wsa_qkv_ref[l], preferred_element_type=jnp.float32)
        a = attention(qkv[:, :H * dk], qkv[:, H * dk:], tmask_add, wsa_o_ref[l], S)
        x = _layer_norm(a + x, lg[0:1], lb[0:1])

        # --- encoder-decoder attention ---
        x_bf = x.astype(jnp.bfloat16)
        q = jnp.dot(x_bf, wca_q_ref[l], preferred_element_type=jnp.float32)
        kv = jnp.dot(enc_bf, wca_kv_ref[l], preferred_element_type=jnp.float32)
        a = attention(q, kv, smask_add, wca_o_ref[l], S_src)
        x = _layer_norm(a + x, lg[1:2], lb[1:2])

        # --- position-wise FFN ---
        x_bf = x.astype(jnp.bfloat16)
        h1 = jnp.dot(x_bf, w1_ref[l], preferred_element_type=jnp.float32) + b1_ref[l]
        h1 = jnp.maximum(h1, 0.0)
        y = jnp.dot(h1.astype(jnp.bfloat16), w2_ref[l],
                    preferred_element_type=jnp.float32) + b2_ref[l]
        x = _layer_norm(y + x, lg[2:3], lb[2:3])
        return x

    x = lax.fori_loop(0, n_layers, layer_body, x)
    o_ref[...] = x.reshape(TB, S, D)


# --------------------------------------------------------------- wrapper -----

def pallas_decoder(x_emb, pos, enc_out, tgt_mask, src_mask,
                   ln0_g, ln0_b, packed, n_layers, n_head, d_k, d_v, tb=1):
    B, S, D = x_emb.shape
    S_src = enc_out.shape[1]
    d_hid = packed["w1"].shape[-1]
    assert B % tb == 0

    def rep(a):  # full-array, grid-constant block (DMA'd once, stays in VMEM)
        return pl.BlockSpec(a.shape, lambda b: (0,) * a.ndim)

    # advisory cost estimate so XLA schedules surrounding ops sensibly
    H, L = n_head, n_layers
    flops = 2 * B * L * (
        S * D * 3 * H * d_k + S * D * H * d_k + S_src * D * 2 * H * d_k
        + H * S * S * (d_k + d_v) + H * S * S_src * (d_k + d_v)
        + 2 * S * H * d_v * D + 2 * S * D * d_hid)
    transcendentals = B * L * H * (S * S + S * S_src)
    weight_arrays = [packed[k] for k in ("wsa_qkv", "wsa_o", "wca_q", "wca_kv",
                                         "wca_o", "lng", "lnb", "w1", "b1", "w2", "b2")]
    bytes_accessed = (sum(a.size * a.dtype.itemsize
                          for a in [x_emb, pos, enc_out, tgt_mask, src_mask,
                                    ln0_g, ln0_b] + weight_arrays)
                      + B * S * D * 4)

    kern = functools.partial(decoder_kernel, n_layers, n_head, d_k, d_v)
    # TODO(synk): at production sizes stream weights per-layer (layer index as an
    # inner "arbitrary" grid axis / emit_pipeline) instead of all-L residency.
    return pl.pallas_call(
        kern,
        out_shape=jax.ShapeDtypeStruct((B, S, D), jnp.float32),
        grid=(B // tb,),
        in_specs=[
            pl.BlockSpec((tb, S, D), lambda b: (b, 0, 0)),       # embedded trg
            rep(pos),                                            # (S, D)
            pl.BlockSpec((tb, S_src, D), lambda b: (b, 0, 0)),   # enc_output
            pl.BlockSpec((tb, S, S), lambda b: (b, 0, 0)),       # tgt_mask
            pl.BlockSpec((tb, 1, S_src), lambda b: (b, 0, 0)),   # src_mask
            rep(ln0_g), rep(ln0_b),
            rep(packed["wsa_qkv"]), rep(packed["wsa_o"]),
            rep(packed["wca_q"]), rep(packed["wca_kv"]), rep(packed["wca_o"]),
            rep(packed["lng"]), rep(packed["lnb"]),
            rep(packed["w1"]), rep(packed["b1"]),
            rep(packed["w2"]), rep(packed["b2"]),
        ],
        out_specs=pl.BlockSpec((tb, S, D), lambda b: (b, 0, 0)),
        compiler_params=pltpu.CompilerParams(
            dimension_semantics=("parallel",),
            vmem_limit_bytes=64 * 1024 * 1024),
        cost_estimate=pl.CostEstimate(flops=int(flops),
                                      transcendentals=int(transcendentals),
                                      bytes_accessed=int(bytes_accessed)),
    )(x_emb, pos, enc_out, tgt_mask, src_mask, ln0_g, ln0_b,
      packed["wsa_qkv"], packed["wsa_o"],
      packed["wca_q"], packed["wca_kv"], packed["wca_o"],
      packed["lng"], packed["lnb"],
      packed["w1"], packed["b1"], packed["w2"], packed["b2"])


# -------------------------------------------------------- parameter setup ----

def sinusoid_table(n_position, d_model):
    pos = np.arange(n_position)[:, None].astype(np.float64)
    j = np.arange(d_model)[None, :]
    angle = pos / np.power(10000.0, 2 * (j // 2) / d_model)
    tbl = np.zeros((n_position, d_model), dtype=np.float64)
    tbl[:, 0::2] = np.sin(angle[:, 0::2])
    tbl[:, 1::2] = np.cos(angle[:, 1::2])
    return jnp.asarray(tbl, dtype=jnp.float32)


def init_params(key, vocab_size, n_layers, n_head, d_k, d_v, d_model, d_hid, pad_idx):
    keys = jax.random.split(key, 1 + n_layers)
    emb = 0.02 * jax.random.normal(keys[0], (vocab_size, d_model), jnp.float32)
    emb = emb.at[pad_idx].set(0.0)                    # padding_idx row is zero
    s_dm = 1.0 / np.sqrt(d_model)
    s_dh = 1.0 / np.sqrt(d_hid)
    layers = []
    for l in range(n_layers):
        k = jax.random.split(keys[1 + l], 10)
        layers.append(dict(
            sa_wq=s_dm * jax.random.normal(k[0], (d_model, n_head * d_k), jnp.float32),
            sa_wk=s_dm * jax.random.normal(k[1], (d_model, n_head * d_k), jnp.float32),
            sa_wv=s_dm * jax.random.normal(k[2], (d_model, n_head * d_v), jnp.float32),
            sa_wo=s_dm * jax.random.normal(k[3], (n_head * d_v, d_model), jnp.float32),
            ln1_g=jnp.ones((1, d_model), jnp.float32),
            ln1_b=jnp.zeros((1, d_model), jnp.float32),
            ca_wq=s_dm * jax.random.normal(k[4], (d_model, n_head * d_k), jnp.float32),
            ca_wk=s_dm * jax.random.normal(k[5], (d_model, n_head * d_k), jnp.float32),
            ca_wv=s_dm * jax.random.normal(k[6], (d_model, n_head * d_v), jnp.float32),
            ca_wo=s_dm * jax.random.normal(k[7], (n_head * d_v, d_model), jnp.float32),
            ln2_g=jnp.ones((1, d_model), jnp.float32),
            ln2_b=jnp.zeros((1, d_model), jnp.float32),
            w1=s_dm * jax.random.normal(k[8], (d_model, d_hid), jnp.float32),
            b1=jnp.zeros((1, d_hid), jnp.float32),
            w2=s_dh * jax.random.normal(k[9], (d_hid, d_model), jnp.float32),
            b2=jnp.zeros((1, d_model), jnp.float32),
            ln3_g=jnp.ones((1, d_model), jnp.float32),
            ln3_b=jnp.zeros((1, d_model), jnp.float32),
        ))
    ln0_g = jnp.ones((1, d_model), jnp.float32)
    ln0_b = jnp.zeros((1, d_model), jnp.float32)
    return emb, ln0_g, ln0_b, layers


def pack_layers(layers, d_k):
    """Fuse per-head nn.Linear weights into whole-layer bf16 slabs (scale folded)."""
    scale = 1.0 / float(np.sqrt(d_k))
    wsa_qkv, wsa_o, wca_q, wca_kv, wca_o = [], [], [], [], []
    lng, lnb, w1, b1, w2, b2 = [], [], [], [], [], []
    for p in layers:
        wsa_qkv.append(jnp.concatenate(
            [p["sa_wq"] * scale, p["sa_wk"], p["sa_wv"]], axis=1))   # (D, 3*H*dk)
        wsa_o.append(p["sa_wo"])                                     # (H*dv, D)
        wca_q.append(p["ca_wq"] * scale)                             # (D, H*dk)
        wca_kv.append(jnp.concatenate([p["ca_wk"], p["ca_wv"]], axis=1))
        wca_o.append(p["ca_wo"])
        lng.append(jnp.stack([p["ln1_g"][0], p["ln2_g"][0], p["ln3_g"][0]], 0))
        lnb.append(jnp.stack([p["ln1_b"][0], p["ln2_b"][0], p["ln3_b"][0]], 0))
        w1.append(p["w1"]); b1.append(p["b1"]); w2.append(p["w2"]); b2.append(p["b2"])

    bf = lambda xs: jnp.stack(xs, 0).astype(jnp.bfloat16)
    f32 = lambda xs: jnp.stack(xs, 0).astype(jnp.float32)
    return dict(
        wsa_qkv=bf(wsa_qkv), wsa_o=bf(wsa_o),
        wca_q=bf(wca_q), wca_kv=bf(wca_kv), wca_o=bf(wca_o),
        lng=f32(lng), lnb=f32(lnb),              # (L, 3, D)
        w1=bf(w1), b1=f32(b1), w2=bf(w2), b2=f32(b2))


def decoder_forward(trg_seq, tgt_mask, enc_output, src_mask,
                    emb, pos_tbl, ln0_g, ln0_b, packed,
                    n_layers, n_head, d_k, d_v):
    # TODO(synk): embedding gather (nn.Embedding) stays as JAX glue (jnp.take);
    # a data-dependent row gather is not worth a manual DMA at this size.
    x = jnp.take(emb, trg_seq, axis=0)                # (B, S, D)
    S = trg_seq.shape[1]
    return pallas_decoder(x, pos_tbl[:S], enc_output, tgt_mask, src_mask,
                          ln0_g, ln0_b, packed, n_layers, n_head, d_k, d_v, tb=1)


# ------------------------------------------------------------------- main ----

if __name__ == "__main__":
    vocab_size, n_layers, n_head = 50, 2, 2
    d_k = d_v = 16
    d_model, d_hid = 32, 64
    pad_idx, description_max_length = 0, 16
    B, S_tgt, S_src = 2, 8, 8

    key = jax.random.PRNGKey(0)
    k_par, k_seq, k_enc = jax.random.split(key, 3)

    emb, ln0_g, ln0_b, layers = init_params(
        k_par, vocab_size, n_layers, n_head, d_k, d_v, d_model, d_hid, pad_idx)
    packed = pack_layers(layers, d_k)
    pos_tbl = sinusoid_table(description_max_length, d_model)

    trg_seq = jax.random.randint(k_seq, (B, S_tgt), 1, vocab_size, dtype=jnp.int32)
    trg_seq = trg_seq.at[1, S_tgt - 2:].set(pad_idx)          # some target padding

    # tgt_mask = pad mask & causal (subsequent) mask  -> (B, S, S), 1=keep
    pad_mask = (trg_seq != pad_idx)[:, None, :]               # (B, 1, S)
    causal = jnp.tril(jnp.ones((S_tgt, S_tgt), dtype=jnp.bool_))[None]  # (1, S, S)
    tgt_mask = (pad_mask & causal).astype(jnp.float32)        # (B, S, S)

    # src_mask = source padding mask over encoder positions -> (B, 1, S_src)
    src_mask = jnp.ones((B, 1, S_src), jnp.float32)
    src_mask = src_mask.at[1, 0, S_src - 1:].set(0.0)

    enc_output = 0.1 * jax.random.normal(k_enc, (B, S_src, d_model), jnp.float32)

    out = decoder_forward(trg_seq, tgt_mask, enc_output, src_mask,
                          emb, pos_tbl, ln0_g, ln0_b, packed,
                          n_layers, n_head, d_k, d_v)
    out = jax.block_until_ready(out)
    assert out.shape == (B, S_tgt, d_model)
    assert bool(jnp.all(jnp.isfinite(out)))
    # TODO(synk): dropout layers are identity (eval mode); no in-kernel RNG dropout.
    print("KERNEL_OK")
</pallas_src>

<mosaic_0001>
module attributes {stable_mosaic.version = 11 : i64} {
  func.func @decoder_kernel(%arg0: i32, %arg1: memref<1x8x32xf32, #tpu.memory_space<vmem>>, %arg2: memref<8x32xf32, #tpu.memory_space<vmem>>, %arg3: memref<1x8x32xf32, #tpu.memory_space<vmem>>, %arg4: memref<1x8x8xf32, #tpu.memory_space<vmem>>, %arg5: memref<1x1x8xf32, #tpu.memory_space<vmem>>, %arg6: memref<1x32xf32, #tpu.memory_space<vmem>>, %arg7: memref<1x32xf32, #tpu.memory_space<vmem>>, %arg8: memref<2x32x96xbf16, #tpu.memory_space<vmem>>, %arg9: memref<2x32x32xbf16, #tpu.memory_space<vmem>>, %arg10: memref<2x32x32xbf16, #tpu.memory_space<vmem>>, %arg11: memref<2x32x64xbf16, #tpu.memory_space<vmem>>, %arg12: memref<2x32x32xbf16, #tpu.memory_space<vmem>>, %arg13: memref<2x3x32xf32, #tpu.memory_space<vmem>>, %arg14: memref<2x3x32xf32, #tpu.memory_space<vmem>>, %arg15: memref<2x32x64xbf16, #tpu.memory_space<vmem>>, %arg16: memref<2x1x64xf32, #tpu.memory_space<vmem>>, %arg17: memref<2x64x32xbf16, #tpu.memory_space<vmem>>, %arg18: memref<2x1x32xf32, #tpu.memory_space<vmem>>, %arg19: memref<1x8x32xf32, #tpu.memory_space<vmem>>) attributes {dimension_semantics = [#tpu.dimension_semantics<parallel>], iteration_bounds = array<i64: 2>, scalar_prefetch = 0 : i64, scratch_operands = 0 : i64, tpu.core_type = #tpu.core_type<tc>, window_params = [{transform_indices = @transform_0, window_bounds = array<i64: 1, 8, 32>}, {pipeline_mode = #tpu.pipeline_mode<synchronous>, transform_indices = @transform_1, window_bounds = array<i64: 8, 32>}, {transform_indices = @transform_2, window_bounds = array<i64: 1, 8, 32>}, {transform_indices = @transform_3, window_bounds = array<i64: 1, 8, 8>}, {transform_indices = @transform_4, window_bounds = array<i64: 1, 1, 8>}, {pipeline_mode = #tpu.pipeline_mode<synchronous>, transform_indices = @transform_5, window_bounds = array<i64: 1, 32>}, {pipeline_mode = #tpu.pipeline_mode<synchronous>, transform_indices = @transform_6, window_bounds = array<i64: 1, 32>}, {pipeline_mode = #tpu.pipeline_mode<synchronous>, transform_indices = @transform_7, window_bounds = array<i64: 2, 32, 96>}, {pipeline_mode = #tpu.pipeline_mode<synchronous>, transform_indices = @transform_8, window_bounds = array<i64: 2, 32, 32>}, {pipeline_mode = #tpu.pipeline_mode<synchronous>, transform_indices = @transform_9, window_bounds = array<i64: 2, 32, 32>}, {pipeline_mode = #tpu.pipeline_mode<synchronous>, transform_indices = @transform_10, window_bounds = array<i64: 2, 32, 64>}, {pipeline_mode = #tpu.pipeline_mode<synchronous>, transform_indices = @transform_11, window_bounds = array<i64: 2, 32, 32>}, {pipeline_mode = #tpu.pipeline_mode<synchronous>, transform_indices = @transform_12, window_bounds = array<i64: 2, 3, 32>}, {pipeline_mode = #tpu.pipeline_mode<synchronous>, transform_indices = @transform_13, window_bounds = array<i64: 2, 3, 32>}, {pipeline_mode = #tpu.pipeline_mode<synchronous>, transform_indices = @transform_14, window_bounds = array<i64: 2, 32, 64>}, {pipeline_mode = #tpu.pipeline_mode<synchronous>, transform_indices = @transform_15, window_bounds = array<i64: 2, 1, 64>}, {pipeline_mode = #tpu.pipeline_mode<synchronous>, transform_indices = @transform_16, window_bounds = array<i64: 2, 64, 32>}, {pipeline_mode = #tpu.pipeline_mode<synchronous>, transform_indices = @transform_17, window_bounds = array<i64: 2, 1, 32>}, {transform_indices = @transform_18, window_bounds = array<i64: 1, 8, 32>}]} {
    %c0 = arith.constant 0 : index
    %c0_0 = arith.constant 0 : index
    %c0_1 = arith.constant 0 : index
    %0 = vector.load %arg1[%c0, %c0_0, %c0_1] : memref<1x8x32xf32, #tpu.memory_space<vmem>>, vector<1x8x32xf32>
    %c0_2 = arith.constant 0 : index
    %c0_3 = arith.constant 0 : index
    %1 = vector.load %arg2[%c0_2, %c0_3] : memref<8x32xf32, #tpu.memory_space<vmem>>, vector<8x32xf32>
    %2 = vector.shape_cast %1 : vector<8x32xf32> to vector<1x8x32xf32>
    %3 = arith.addf %0, %2 : vector<1x8x32xf32>
    %4 = vector.shape_cast %3 : vector<1x8x32xf32> to vector<8x32xf32>
    %c0_4 = arith.constant 0 : index
    %c0_5 = arith.constant 0 : index
    %5 = vector.load %arg6[%c0_4, %c0_5] : memref<1x32xf32, #tpu.memory_space<vmem>>, vector<1x32xf32>
    %c0_6 = arith.constant 0 : index
    %c0_7 = arith.constant 0 : index
    %6 = vector.load %arg7[%c0_6, %c0_7] : memref<1x32xf32, #tpu.memory_space<vmem>>, vector<1x32xf32>
    %cst = arith.constant dense<0.000000e+00> : vector<8xf32>
    %7 = vector.multi_reduction <add>, %4, %cst [1] : vector<8x32xf32> to vector<8xf32>
    %8 = vector.shape_cast %7 : vector<8xf32> to vector<8x1xf32>
    %cst_8 = arith.constant 3.200000e+01 : f32
    %9 = vector.broadcast %cst_8 : f32 to vector<8x1xf32>
    %10 = arith.divf %8, %9 : vector<8x1xf32>
    %11 = vector.broadcast %10 : vector<8x1xf32> to vector<8x32xf32>
    %12 = arith.subf %4, %11 : vector<8x32xf32>
    %13 = arith.mulf %12, %12 : vector<8x32xf32>
    %cst_9 = arith.constant dense<0.000000e+00> : vector<8xf32>
    %14 = vector.multi_reduction <add>, %13, %cst_9 [1] : vector<8x32xf32> to vector<8xf32>
    %15 = vector.shape_cast %14 : vector<8xf32> to vector<8x1xf32>
    %cst_10 = arith.constant 3.200000e+01 : f32
    %16 = vector.broadcast %cst_10 : f32 to vector<8x1xf32>
    %17 = arith.divf %15, %16 : vector<8x1xf32>
    %18 = vector.broadcast %10 : vector<8x1xf32> to vector<8x32xf32>
    %19 = arith.subf %4, %18 : vector<8x32xf32>
    %cst_11 = arith.constant 9.99999997E-7 : f32
    %20 = vector.broadcast %cst_11 : f32 to vector<8x1xf32>
    %21 = arith.addf %17, %20 : vector<8x1xf32>
    %22 = math.rsqrt %21 : vector<8x1xf32>
    %23 = vector.broadcast %22 : vector<8x1xf32> to vector<8x32xf32>
    %24 = arith.mulf %19, %23 : vector<8x32xf32>
    %25 = vector.broadcast %5 : vector<1x32xf32> to vector<8x32xf32>
    %26 = arith.mulf %24, %25 : vector<8x32xf32>
    %27 = vector.broadcast %6 : vector<1x32xf32> to vector<8x32xf32>
    %28 = arith.addf %26, %27 : vector<8x32xf32>
    %c0_12 = arith.constant 0 : index
    %c0_13 = arith.constant 0 : index
    %c0_14 = arith.constant 0 : index
    %29 = vector.load %arg3[%c0_12, %c0_13, %c0_14] : memref<1x8x32xf32, #tpu.memory_space<vmem>>, vector<1x8x32xf32>
    %30 = vector.shape_cast %29 : vector<1x8x32xf32> to vector<8x32xf32>
    %31 = arith.truncf %30 : vector<8x32xf32> to vector<8x32xbf16>
    %c0_15 = arith.constant 0 : index
    %c0_16 = arith.constant 0 : index
    %c0_17 = arith.constant 0 : index
    %32 = vector.load %arg4[%c0_15, %c0_16, %c0_17] : memref<1x8x8xf32, #tpu.memory_space<vmem>>, vector<1x8x8xf32>
    %cst_18 = arith.constant 0.000000e+00 : f32
    %33 = vector.broadcast %cst_18 : f32 to vector<1x8x8xf32>
    %34 = arith.cmpf ogt, %32, %33 : vector<1x8x8xf32>
    %cst_19 = arith.constant 0.000000e+00 : f32
    %cst_20 = arith.constant -1.000000e+09 : f32
    %35 = vector.broadcast %cst_19 : f32 to vector<1x8x8xf32>
    %36 = vector.broadcast %cst_20 : f32 to vector<1x8x8xf32>
    %37 = arith.select %34, %35, %36 : vector<1x8x8xi1>, vector<1x8x8xf32>
    %c0_21 = arith.constant 0 : index
    %c0_22 = arith.constant 0 : index
    %c0_23 = arith.constant 0 : index
    %38 = vector.load %arg5[%c0_21, %c0_22, %c0_23] : memref<1x1x8xf32, #tpu.memory_space<vmem>>, vector<1x1x8xf32>
    %cst_24 = arith.constant 0.000000e+00 : f32
    %39 = vector.broadcast %cst_24 : f32 to vector<1x1x8xf32>
    %40 = arith.cmpf ogt, %38, %39 : vector<1x1x8xf32>
    %cst_25 = arith.constant 0.000000e+00 : f32
    %cst_26 = arith.constant -1.000000e+09 : f32
    %41 = vector.broadcast %cst_25 : f32 to vector<1x1x8xf32>
    %42 = vector.broadcast %cst_26 : f32 to vector<1x1x8xf32>
    %43 = arith.select %40, %41, %42 : vector<1x1x8xi1>, vector<1x1x8xf32>
    %c0_i32 = arith.constant 0 : i32
    %c2_i32 = arith.constant 2 : i32
    %44 = arith.addi %c0_i32, %c2_i32 : i32
    %c1_i32 = arith.constant 1 : i32
    %45 = scf.for %arg20 = %c0_i32 to %44 step %c1_i32 iter_args(%arg21 = %28) -> (vector<8x32xf32>)  : i32 {
      %48 = arith.index_cast %arg20 : i32 to index
      %c0_31 = arith.constant 0 : index
      %c0_32 = arith.constant 0 : index
      %49 = vector.load %arg13[%48, %c0_31, %c0_32] : memref<2x3x32xf32, #tpu.memory_space<vmem>>, vector<1x3x32xf32>
      %50 = vector.shape_cast %49 : vector<1x3x32xf32> to vector<3x32xf32>
      %51 = arith.index_cast %arg20 : i32 to index
      %c0_33 = arith.constant 0 : index
      %c0_34 = arith.constant 0 : index
      %52 = vector.load %arg14[%51, %c0_33, %c0_34] : memref<2x3x32xf32, #tpu.memory_space<vmem>>, vector<1x3x32xf32>
      %53 = vector.shape_cast %52 : vector<1x3x32xf32> to vector<3x32xf32>
      %54 = arith.truncf %arg21 : vector<8x32xf32> to vector<8x32xbf16>
      %55 = arith.index_cast %arg20 : i32 to index
      %c0_35 = arith.constant 0 : index
      %c0_36 = arith.constant 0 : index
      %56 = vector.load %arg8[%55, %c0_35, %c0_36] : memref<2x32x96xbf16, #tpu.memory_space<vmem>>, vector<1x32x96xbf16>
      %57 = vector.shape_cast %56 : vector<1x32x96xbf16> to vector<32x96xbf16>
      %cst_37 = arith.constant dense<0.000000e+00> : vector<8x96xf32>
      %58 = tpu.matmul %54, %57, %cst_37 {dimension_numbers = #tpu.dot_dimension_numbers<[1], [0], [0], [1], [0, 0, 1, 1], [], []>} : vector<8x32xbf16>, vector<32x96xbf16>, vector<8x96xf32> -> vector<8x96xf32>
      %59 = vector.extract_strided_slice %58 {offsets = [0, 0], sizes = [8, 32], strides = [1, 1]} : vector<8x96xf32> to vector<8x32xf32>
      %60 = vector.extract_strided_slice %58 {offsets = [0, 32], sizes = [8, 64], strides = [1, 1]} : vector<8x96xf32> to vector<8x64xf32>
      %61 = arith.index_cast %arg20 : i32 to index
      %c0_38 = arith.constant 0 : index
      %c0_39 = arith.constant 0 : index
      %62 = vector.load %arg9[%61, %c0_38, %c0_39] : memref<2x32x32xbf16, #tpu.memory_space<vmem>>, vector<1x32x32xbf16>
      %63 = vector.shape_cast %62 : vector<1x32x32xbf16> to vector<32x32xbf16>
      %64 = vector.shape_cast %37 : vector<1x8x8xf32> to vector<8x8xf32>
      %65 = vector.extract_strided_slice %59 {offsets = [0, 0], sizes = [8, 16], strides = [1, 1]} : vector<8x32xf32> to vector<8x16xf32>
      %66 = arith.truncf %65 : vector<8x16xf32> to vector<8x16xbf16>
      %67 = vector.extract_strided_slice %60 {offsets = [0, 0], sizes = [8, 16], strides = [1, 1]} : vector<8x64xf32> to vector<8x16xf32>
      %68 = arith.truncf %67 : vector<8x16xf32> to vector<8x16xbf16>
      %69 = vector.extract_strided_slice %60 {offsets = [0, 32], sizes = [8, 16], strides = [1, 1]} : vector<8x64xf32> to vector<8x16xf32>
      %70 = arith.truncf %69 : vector<8x16xf32> to vector<8x16xbf16>
      %cst_40 = arith.constant dense<0.000000e+00> : vector<8x8xf32>
      %71 = tpu.matmul %66, %68, %cst_40 {dimension_numbers = #tpu.dot_dimension_numbers<[1], [1], [0], [0], [0, 0, 1, 0], [], []>} : vector<8x16xbf16>, vector<8x16xbf16>, vector<8x8xf32> -> vector<8x8xf32>
      %72 = arith.addf %71, %64 : vector<8x8xf32>
      %cst_41 = arith.constant dense<0xFF800000> : vector<8xf32>
      %73 = vector.multi_reduction <maximumf>, %72, %cst_41 [1] : vector<8x8xf32> to vector<8xf32>
      %74 = vector.shape_cast %73 : vector<8xf32> to vector<8x1xf32>
      %75 = vector.broadcast %74 : vector<8x1xf32> to vector<8x8xf32>
      %76 = arith.subf %72, %75 : vector<8x8xf32>
      %77 = math.exp %76 : vector<8x8xf32>
      %cst_42 = arith.constant dense<0.000000e+00> : vector<8xf32>
      %78 = vector.multi_reduction <add>, %77, %cst_42 [1] : vector<8x8xf32> to vector<8xf32>
      %79 = vector.shape_cast %78 : vector<8xf32> to vector<8x1xf32>
      %80 = vector.broadcast %79 : vector<8x1xf32> to vector<8x8xf32>
      %81 = arith.divf %77, %80 : vector<8x8xf32>
      %82 = arith.truncf %81 : vector<8x8xf32> to vector<8x8xbf16>
      %cst_43 = arith.constant dense<0.000000e+00> : vector<8x16xf32>
      %83 = tpu.matmul %82, %70, %cst_43 {dimension_numbers = #tpu.dot_dimension_numbers<[1], [0], [0], [1], [0, 0, 1, 1], [], []>} : vector<8x8xbf16>, vector<8x16xbf16>, vector<8x16xf32> -> vector<8x16xf32>
      %84 = vector.extract_strided_slice %59 {offsets = [0, 16], sizes = [8, 16], strides = [1, 1]} : vector<8x32xf32> to vector<8x16xf32>
      %85 = arith.truncf %84 : vector<8x16xf32> to vector<8x16xbf16>
      %86 = vector.extract_strided_slice %60 {offsets = [0, 16], sizes = [8, 16], strides = [1, 1]} : vector<8x64xf32> to vector<8x16xf32>
      %87 = arith.truncf %86 : vector<8x16xf32> to vector<8x16xbf16>
      %88 = vector.extract_strided_slice %60 {offsets = [0, 48], sizes = [8, 16], strides = [1, 1]} : vector<8x64xf32> to vector<8x16xf32>
      %89 = arith.truncf %88 : vector<8x16xf32> to vector<8x16xbf16>
      %cst_44 = arith.constant dense<0.000000e+00> : vector<8x8xf32>
      %90 = tpu.matmul %85, %87, %cst_44 {dimension_numbers = #tpu.dot_dimension_numbers<[1], [1], [0], [0], [0, 0, 1, 0], [], []>} : vector<8x16xbf16>, vector<8x16xbf16>, vector<8x8xf32> -> vector<8x8xf32>
      %91 = arith.addf %90, %64 : vector<8x8xf32>
      %cst_45 = arith.constant dense<0xFF800000> : vector<8xf32>
      %92 = vector.multi_reduction <maximumf>, %91, %cst_45 [1] : vector<8x8xf32> to vector<8xf32>
      %93 = vector.shape_cast %92 : vector<8xf32> to vector<8x1xf32>
      %94 = vector.broadcast %93 : vector<8x1xf32> to vector<8x8xf32>
      %95 = arith.subf %91, %94 : vector<8x8xf32>
      %96 = math.exp %95 : vector<8x8xf32>
      %cst_46 = arith.constant dense<0.000000e+00> : vector<8xf32>
      %97 = vector.multi_reduction <add>, %96, %cst_46 [1] : vector<8x8xf32> to vector<8xf32>
      %98 = vector.shape_cast %97 : vector<8xf32> to vector<8x1xf32>
      %99 = vector.broadcast %98 : vector<8x1xf32> to vector<8x8xf32>
      %100 = arith.divf %96, %99 : vector<8x8xf32>
      %101 = arith.truncf %100 : vector<8x8xf32> to vector<8x8xbf16>
      %cst_47 = arith.constant dense<0.000000e+00> : vector<8x16xf32>
      %102 = tpu.matmul %101, %89, %cst_47 {dimension_numbers = #tpu.dot_dimension_numbers<[1], [0], [0], [1], [0, 0, 1, 1], [], []>} : vector<8x8xbf16>, vector<8x16xbf16>, vector<8x16xf32> -> vector<8x16xf32>
      %103 = tpu.concatenate %83, %102 in 1 : vector<8x16xf32>, vector<8x16xf32> -> vector<8x32xf32>
      %104 = arith.truncf %103 : vector<8x32xf32> to vector<8x32xbf16>
      %cst_48 = arith.constant dense<0.000000e+00> : vector<8x32xf32>
      %105 = tpu.matmul %104, %63, %cst_48 {dimension_numbers = #tpu.dot_dimension_numbers<[1], [0], [0], [1], [0, 0, 1, 1], [], []>} : vector<8x32xbf16>, vector<32x32xbf16>, vector<8x32xf32> -> vector<8x32xf32>
      %106 = arith.addf %105, %arg21 : vector<8x32xf32>
      %107 = vector.extract_strided_slice %50 {offsets = [0, 0], sizes = [1, 32], strides = [1, 1]} : vector<3x32xf32> to vector<1x32xf32>
      %108 = vector.extract_strided_slice %53 {offsets = [0, 0], sizes = [1, 32], strides = [1, 1]} : vector<3x32xf32> to vector<1x32xf32>
      %cst_49 = arith.constant dense<0.000000e+00> : vector<8xf32>
      %109 = vector.multi_reduction <add>, %106, %cst_49 [1] : vector<8x32xf32> to vector<8xf32>
      %110 = vector.shape_cast %109 : vector<8xf32> to vector<8x1xf32>
      %cst_50 = arith.constant 3.200000e+01 : f32
      %111 = vector.broadcast %cst_50 : f32 to vector<8x1xf32>
      %112 = arith.divf %110, %111 : vector<8x1xf32>
      %113 = vector.broadcast %112 : vector<8x1xf32> to vector<8x32xf32>
      %114 = arith.subf %106, %113 : vector<8x32xf32>
      %115 = arith.mulf %114, %114 : vector<8x32xf32>
      %cst_51 = arith.constant dense<0.000000e+00> : vector<8xf32>
      %116 = vector.multi_reduction <add>, %115, %cst_51 [1] : vector<8x32xf32> to vector<8xf32>
      %117 = vector.shape_cast %116 : vector<8xf32> to vector<8x1xf32>
      %cst_52 = arith.constant 3.200000e+01 : f32
      %118 = vector.broadcast %cst_52 : f32 to vector<8x1xf32>
      %119 = arith.divf %117, %118 : vector<8x1xf32>
      %120 = vector.broadcast %112 : vector<8x1xf32> to vector<8x32xf32>
      %121 = arith.subf %106, %120 : vector<8x32xf32>
      %cst_53 = arith.constant 9.99999997E-7 : f32
      %122 = vector.broadcast %cst_53 : f32 to vector<8x1xf32>
      %123 = arith.addf %119, %122 : vector<8x1xf32>
      %124 = math.rsqrt %123 : vector<8x1xf32>
      %125 = vector.broadcast %124 : vector<8x1xf32> to vector<8x32xf32>
      %126 = arith.mulf %121, %125 : vector<8x32xf32>
      %127 = vector.broadcast %107 : vector<1x32xf32> to vector<8x32xf32>
      %128 = arith.mulf %126, %127 : vector<8x32xf32>
      %129 = vector.broadcast %108 : vector<1x32xf32> to vector<8x32xf32>
      %130 = arith.addf %128, %129 : vector<8x32xf32>
      %131 = arith.truncf %130 : vector<8x32xf32> to vector<8x32xbf16>
      %132 = arith.index_cast %arg20 : i32 to index
      %c0_54 = arith.constant 0 : index
      %c0_55 = arith.constant 0 : index
      %133 = vector.load %arg10[%132, %c0_54, %c0_55] : memref<2x32x32xbf16, #tpu.memory_space<vmem>>, vector<1x32x32xbf16>
      %134 = vector.shape_cast %133 : vector<1x32x32xbf16> to vector<32x32xbf16>
      %cst_56 = arith.constant dense<0.000000e+00> : vector<8x32xf32>
      %135 = tpu.matmul %131, %134, %cst_56 {dimension_numbers = #tpu.dot_dimension_numbers<[1], [0], [0], [1], [0, 0, 1, 1], [], []>} : vector<8x32xbf16>, vector<32x32xbf16>, vector<8x32xf32> -> vector<8x32xf32>
      %136 = arith.index_cast %arg20 : i32 to index
      %c0_57 = arith.constant 0 : index
      %c0_58 = arith.constant 0 : index
      %137 = vector.load %arg11[%136, %c0_57, %c0_58] : memref<2x32x64xbf16, #tpu.memory_space<vmem>>, vector<1x32x64xbf16>
      %138 = vector.shape_cast %137 : vector<1x32x64xbf16> to vector<32x64xbf16>
      %cst_59 = arith.constant dense<0.000000e+00> : vector<8x64xf32>
      %139 = tpu.matmul %31, %138, %cst_59 {dimension_numbers = #tpu.dot_dimension_numbers<[1], [0], [0], [1], [0, 0, 1, 1], [], []>} : vector<8x32xbf16>, vector<32x64xbf16>, vector<8x64xf32> -> vector<8x64xf32>
      %140 = arith.index_cast %arg20 : i32 to index
      %c0_60 = arith.constant 0 : index
      %c0_61 = arith.constant 0 : index
      %141 = vector.load %arg12[%140, %c0_60, %c0_61] : memref<2x32x32xbf16, #tpu.memory_space<vmem>>, vector<1x32x32xbf16>
      %142 = vector.shape_cast %141 : vector<1x32x32xbf16> to vector<32x32xbf16>
      %143 = vector.shape_cast %43 : vector<1x1x8xf32> to vector<1x8xf32>
      %144 = vector.extract_strided_slice %135 {offsets = [0, 0], sizes = [8, 16], strides = [1, 1]} : vector<8x32xf32> to vector<8x16xf32>
      %145 = arith.truncf %144 : vector<8x16xf32> to vector<8x16xbf16>
      %146 = vector.extract_strided_slice %139 {offsets = [0, 0], sizes = [8, 16], strides = [1, 1]} : vector<8x64xf32> to vector<8x16xf32>
      %147 = arith.truncf %146 : vector<8x16xf32> to vector<8x16xbf16>
      %148 = vector.extract_strided_slice %139 {offsets = [0, 32], sizes = [8, 16], strides = [1, 1]} : vector<8x64xf32> to vector<8x16xf32>
      %149 = arith.truncf %148 : vector<8x16xf32> to vector<8x16xbf16>
      %cst_62 = arith.constant dense<0.000000e+00> : vector<8x8xf32>
      %150 = tpu.matmul %145, %147, %cst_62 {dimension_numbers = #tpu.dot_dimension_numbers<[1], [1], [0], [0], [0, 0, 1, 0], [], []>} : vector<8x16xbf16>, vector<8x16xbf16>, vector<8x8xf32> -> vector<8x8xf32>
      %151 = vector.broadcast %143 : vector<1x8xf32> to vector<8x8xf32>
      %152 = arith.addf %150, %151 : vector<8x8xf32>
      %cst_63 = arith.constant dense<0xFF800000> : vector<8xf32>
      %153 = vector.multi_reduction <maximumf>, %152, %cst_63 [1] : vector<8x8xf32> to vector<8xf32>
      %154 = vector.shape_cast %153 : vector<8xf32> to vector<8x1xf32>
      %155 = vector.broadcast %154 : vector<8x1xf32> to vector<8x8xf32>
      %156 = arith.subf %152, %155 : vector<8x8xf32>
      %157 = math.exp %156 : vector<8x8xf32>
      %cst_64 = arith.constant dense<0.000000e+00> : vector<8xf32>
      %158 = vector.multi_reduction <add>, %157, %cst_64 [1] : vector<8x8xf32> to vector<8xf32>
      %159 = vector.shape_cast %158 : vector<8xf32> to vector<8x1xf32>
      %160 = vector.broadcast %159 : vector<8x1xf32> to vector<8x8xf32>
      %161 = arith.divf %157, %160 : vector<8x8xf32>
      %162 = arith.truncf %161 : vector<8x8xf32> to vector<8x8xbf16>
      %cst_65 = arith.constant dense<0.000000e+00> : vector<8x16xf32>
      %163 = tpu.matmul %162, %149, %cst_65 {dimension_numbers = #tpu.dot_dimension_numbers<[1], [0], [0], [1], [0, 0, 1, 1], [], []>} : vector<8x8xbf16>, vector<8x16xbf16>, vector<8x16xf32> -> vector<8x16xf32>
      %164 = vector.extract_strided_slice %135 {offsets = [0, 16], sizes = [8, 16], strides = [1, 1]} : vector<8x32xf32> to vector<8x16xf32>
      %165 = arith.truncf %164 : vector<8x16xf32> to vector<8x16xbf16>
      %166 = vector.extract_strided_slice %139 {offsets = [0, 16], sizes = [8, 16], strides = [1, 1]} : vector<8x64xf32> to vector<8x16xf32>
      %167 = arith.truncf %166 : vector<8x16xf32> to vector<8x16xbf16>
      %168 = vector.extract_strided_slice %139 {offsets = [0, 48], sizes = [8, 16], strides = [1, 1]} : vector<8x64xf32> to vector<8x16xf32>
      %169 = arith.truncf %168 : vector<8x16xf32> to vector<8x16xbf16>
      %cst_66 = arith.constant dense<0.000000e+00> : vector<8x8xf32>
      %170 = tpu.matmul %165, %167, %cst_66 {dimension_numbers = #tpu.dot_dimension_numbers<[1], [1], [0], [0], [0, 0, 1, 0], [], []>} : vector<8x16xbf16>, vector<8x16xbf16>, vector<8x8xf32> -> vector<8x8xf32>
      %171 = vector.broadcast %143 : vector<1x8xf32> to vector<8x8xf32>
      %172 = arith.addf %170, %171 : vector<8x8xf32>
      %cst_67 = arith.constant dense<0xFF800000> : vector<8xf32>
      %173 = vector.multi_reduction <maximumf>, %172, %cst_67 [1] : vector<8x8xf32> to vector<8xf32>
      %174 = vector.shape_cast %173 : vector<8xf32> to vector<8x1xf32>
      %175 = vector.broadcast %174 : vector<8x1xf32> to vector<8x8xf32>
      %176 = arith.subf %172, %175 : vector<8x8xf32>
      %177 = math.exp %176 : vector<8x8xf32>
      %cst_68 = arith.constant dense<0.000000e+00> : vector<8xf32>
      %178 = vector.multi_reduction <add>, %177, %cst_68 [1] : vector<8x8xf32> to vector<8xf32>
      %179 = vector.shape_cast %178 : vector<8xf32> to vector<8x1xf32>
      %180 = vector.broadcast %179 : vector<8x1xf32> to vector<8x8xf32>
      %181 = arith.divf %177, %180 : vector<8x8xf32>
      %182 = arith.truncf %181 : vector<8x8xf32> to vector<8x8xbf16>
      %cst_69 = arith.constant dense<0.000000e+00> : vector<8x16xf32>
      %183 = tpu.matmul %182, %169, %cst_69 {dimension_numbers = #tpu.dot_dimension_numbers<[1], [0], [0], [1], [0, 0, 1, 1], [], []>} : vector<8x8xbf16>, vector<8x16xbf16>, vector<8x16xf32> -> vector<8x16xf32>
      %184 = tpu.concatenate %163, %183 in 1 : vector<8x16xf32>, vector<8x16xf32> -> vector<8x32xf32>
      %185 = arith.truncf %184 : vector<8x32xf32> to vector<8x32xbf16>
      %cst_70 = arith.constant dense<0.000000e+00> : vector<8x32xf32>
      %186 = tpu.matmul %185, %142, %cst_70 {dimension_numbers = #tpu.dot_dimension_numbers<[1], [0], [0], [1], [0, 0, 1, 1], [], []>} : vector<8x32xbf16>, vector<32x32xbf16>, vector<8x32xf32> -> vector<8x32xf32>
      %187 = arith.addf %186, %130 : vector<8x32xf32>
      %188 = vector.extract_strided_slice %50 {offsets = [1, 0], sizes = [1, 32], strides = [1, 1]} : vector<3x32xf32> to vector<1x32xf32>
      %189 = vector.extract_strided_slice %53 {offsets = [1, 0], sizes = [1, 32], strides = [1, 1]} : vector<3x32xf32> to vector<1x32xf32>
      %cst_71 = arith.constant dense<0.000000e+00> : vector<8xf32>
      %190 = vector.multi_reduction <add>, %187, %cst_71 [1] : vector<8x32xf32> to vector<8xf32>
      %191 = vector.shape_cast %190 : vector<8xf32> to vector<8x1xf32>
      %cst_72 = arith.constant 3.200000e+01 : f32
      %192 = vector.broadcast %cst_72 : f32 to vector<8x1xf32>
      %193 = arith.divf %191, %192 : vector<8x1xf32>
      %194 = vector.broadcast %193 : vector<8x1xf32> to vector<8x32xf32>
      %195 = arith.subf %187, %194 : vector<8x32xf32>
      %196 = arith.mulf %195, %195 : vector<8x32xf32>
      %cst_73 = arith.constant dense<0.000000e+00> : vector<8xf32>
      %197 = vector.multi_reduction <add>, %196, %cst_73 [1] : vector<8x32xf32> to vector<8xf32>
      %198 = vector.shape_cast %197 : vector<8xf32> to vector<8x1xf32>
      %cst_74 = arith.constant 3.200000e+01 : f32
      %199 = vector.broadcast %cst_74 : f32 to vector<8x1xf32>
      %200 = arith.divf %198, %199 : vector<8x1xf32>
      %201 = vector.broadcast %193 : vector<8x1xf32> to vector<8x32xf32>
      %202 = arith.subf %187, %201 : vector<8x32xf32>
      %cst_75 = arith.constant 9.99999997E-7 : f32
      %203 = vector.broadcast %cst_75 : f32 to vector<8x1xf32>
      %204 = arith.addf %200, %203 : vector<8x1xf32>
      %205 = math.rsqrt %204 : vector<8x1xf32>
      %206 = vector.broadcast %205 : vector<8x1xf32> to vector<8x32xf32>
      %207 = arith.mulf %202, %206 : vector<8x32xf32>
      %208 = vector.broadcast %188 : vector<1x32xf32> to vector<8x32xf32>
      %209 = arith.mulf %207, %208 : vector<8x32xf32>
      %210 = vector.broadcast %189 : vector<1x32xf32> to vector<8x32xf32>
      %211 = arith.addf %209, %210 : vector<8x32xf32>
      %212 = arith.truncf %211 : vector<8x32xf32> to vector<8x32xbf16>
      %213 = arith.index_cast %arg20 : i32 to index
      %c0_76 = arith.constant 0 : index
      %c0_77 = arith.constant 0 : index
      %214 = vector.load %arg15[%213, %c0_76, %c0_77] : memref<2x32x64xbf16, #tpu.memory_space<vmem>>, vector<1x32x64xbf16>
      %215 = vector.shape_cast %214 : vector<1x32x64xbf16> to vector<32x64xbf16>
      %cst_78 = arith.constant dense<0.000000e+00> : vector<8x64xf32>
      %216 = tpu.matmul %212, %215, %cst_78 {dimension_numbers = #tpu.dot_dimension_numbers<[1], [0], [0], [1], [0, 0, 1, 1], [], []>} : vector<8x32xbf16>, vector<32x64xbf16>, vector<8x64xf32> -> vector<8x64xf32>
      %217 = arith.index_cast %arg20 : i32 to index
      %c0_79 = arith.constant 0 : index
      %c0_80 = arith.constant 0 : index
      %218 = vector.load %arg16[%217, %c0_79, %c0_80] : memref<2x1x64xf32, #tpu.memory_space<vmem>>, vector<1x1x64xf32>
      %219 = vector.shape_cast %218 : vector<1x1x64xf32> to vector<1x64xf32>
      %220 = vector.broadcast %219 : vector<1x64xf32> to vector<8x64xf32>
      %221 = arith.addf %216, %220 : vector<8x64xf32>
      %cst_81 = arith.constant 0.000000e+00 : f32
      %222 = vector.broadcast %cst_81 : f32 to vector<8x64xf32>
      %223 = arith.maximumf %221, %222 : vector<8x64xf32>
      %224 = arith.truncf %223 : vector<8x64xf32> to vector<8x64xbf16>
      %225 = arith.index_cast %arg20 : i32 to index
      %c0_82 = arith.constant 0 : index
      %c0_83 = arith.constant 0 : index
      %226 = vector.load %arg17[%225, %c0_82, %c0_83] : memref<2x64x32xbf16, #tpu.memory_space<vmem>>, vector<1x64x32xbf16>
      %227 = vector.shape_cast %226 : vector<1x64x32xbf16> to vector<64x32xbf16>
      %cst_84 = arith.constant dense<0.000000e+00> : vector<8x32xf32>
      %228 = tpu.matmul %224, %227, %cst_84 {dimension_numbers = #tpu.dot_dimension_numbers<[1], [0], [0], [1], [0, 0, 1, 1], [], []>} : vector<8x64xbf16>, vector<64x32xbf16>, vector<8x32xf32> -> vector<8x32xf32>
      %229 = arith.index_cast %arg20 : i32 to index
      %c0_85 = arith.constant 0 : index
      %c0_86 = arith.constant 0 : index
      %230 = vector.load %arg18[%229, %c0_85, %c0_86] : memref<2x1x32xf32, #tpu.memory_space<vmem>>, vector<1x1x32xf32>
      %231 = vector.shape_cast %230 : vector<1x1x32xf32> to vector<1x32xf32>
      %232 = vector.broadcast %231 : vector<1x32xf32> to vector<8x32xf32>
      %233 = arith.addf %228, %232 : vector<8x32xf32>
      %234 = arith.addf %233, %211 : vector<8x32xf32>
      %235 = vector.extract_strided_slice %50 {offsets = [2, 0], sizes = [1, 32], strides = [1, 1]} : vector<3x32xf32> to vector<1x32xf32>
      %236 = vector.extract_strided_slice %53 {offsets = [2, 0], sizes = [1, 32], strides = [1, 1]} : vector<3x32xf32> to vector<1x32xf32>
      %cst_87 = arith.constant dense<0.000000e+00> : vector<8xf32>
      %237 = vector.multi_reduction <add>, %234, %cst_87 [1] : vector<8x32xf32> to vector<8xf32>
      %238 = vector.shape_cast %237 : vector<8xf32> to vector<8x1xf32>
      %cst_88 = arith.constant 3.200000e+01 : f32
      %239 = vector.broadcast %cst_88 : f32 to vector<8x1xf32>
      %240 = arith.divf %238, %239 : vector<8x1xf32>
      %241 = vector.broadcast %240 : vector<8x1xf32> to vector<8x32xf32>
      %242 = arith.subf %234, %241 : vector<8x32xf32>
      %243 = arith.mulf %242, %242 : vector<8x32xf32>
      %cst_89 = arith.constant dense<0.000000e+00> : vector<8xf32>
      %244 = vector.multi_reduction <add>, %243, %cst_89 [1] : vector<8x32xf32> to vector<8xf32>
      %245 = vector.shape_cast %244 : vector<8xf32> to vector<8x1xf32>
      %cst_90 = arith.constant 3.200000e+01 : f32
      %246 = vector.broadcast %cst_90 : f32 to vector<8x1xf32>
      %247 = arith.divf %245, %246 : vector<8x1xf32>
      %248 = vector.broadcast %240 : vector<8x1xf32> to vector<8x32xf32>
      %249 = arith.subf %234, %248 : vector<8x32xf32>
      %cst_91 = arith.constant 9.99999997E-7 : f32
      %250 = vector.broadcast %cst_91 : f32 to vector<8x1xf32>
      %251 = arith.addf %247, %250 : vector<8x1xf32>
      %252 = math.rsqrt %251 : vector<8x1xf32>
      %253 = vector.broadcast %252 : vector<8x1xf32> to vector<8x32xf32>
      %254 = arith.mulf %249, %253 : vector<8x32xf32>
      %255 = vector.broadcast %235 : vector<1x32xf32> to vector<8x32xf32>
      %256 = arith.mulf %254, %255 : vector<8x32xf32>
      %257 = vector.broadcast %236 : vector<1x32xf32> to vector<8x32xf32>
      %258 = arith.addf %256, %257 : vector<8x32xf32>
      scf.yield %258 : vector<8x32xf32>
    }
    %c2_i32_27 = arith.constant 2 : i32
    %46 = vector.shape_cast %45 : vector<8x32xf32> to vector<1x8x32xf32>
    %c0_28 = arith.constant 0 : index
    %c0_29 = arith.constant 0 : index
    %c0_30 = arith.constant 0 : index
    %47 = vector.load %arg19[%c0_28, %c0_29, %c0_30] : memref<1x8x32xf32, #tpu.memory_space<vmem>>, vector<1x8x32xf32>
    tpu.vector_store %arg19[%c0_28, %c0_29, %c0_30], %46 {strides = array<i32>} : memref<1x8x32xf32, #tpu.memory_space<vmem>>, vector<1x8x32xf32>,
    return
  }
  func.func @transform_0(%arg0: i32) -> (i32, i32, i32) {
    %c0_i32 = arith.constant 0 : i32
    %c0_i32_0 = arith.constant 0 : i32
    %c0_i32_1 = arith.constant 0 : i32
    return %arg0, %c0_i32, %c0_i32_0 : i32, i32, i32
  }
  func.func @transform_1(%arg0: i32) -> (i32, i32) {
    %c0_i32 = arith.constant 0 : i32
    %c0_i32_0 = arith.constant 0 : i32
    %c0_i32_1 = arith.constant 0 : i32
    return %c0_i32, %c0_i32_0 : i32, i32
  }
  func.func @transform_2(%arg0: i32) -> (i32, i32, i32) {
    %c0_i32 = arith.constant 0 : i32
    %c0_i32_0 = arith.constant 0 : i32
    %c0_i32_1 = arith.constant 0 : i32
    return %arg0, %c0_i32, %c0_i32_0 : i32, i32, i32
  }
  func.func @transform_3(%arg0: i32) -> (i32, i32, i32) {
    %c0_i32 = arith.constant 0 : i32
    %c0_i32_0 = arith.constant 0 : i32
    %c0_i32_1 = arith.constant 0 : i32
    return %arg0, %c0_i32, %c0_i32_0 : i32, i32, i32
  }
  func.func @transform_4(%arg0: i32) -> (i32, i32, i32) {
    %c0_i32 = arith.constant 0 : i32
    %c0_i32_0 = arith.constant 0 : i32
    %c0_i32_1 = arith.constant 0 : i32
    return %arg0, %c0_i32, %c0_i32_0 : i32, i32, i32
  }
  func.func @transform_5(%arg0: i32) -> (i32, i32) {
    %c0_i32 = arith.constant 0 : i32
    %c0_i32_0 = arith.constant 0 : i32
    %c0_i32_1 = arith.constant 0 : i32
    return %c0_i32, %c0_i32_0 : i32, i32
  }
  func.func @transform_6(%arg0: i32) -> (i32, i32) {
    %c0_i32 = arith.constant 0 : i32
    %c0_i32_0 = arith.constant 0 : i32
    %c0_i32_1 = arith.constant 0 : i32
    return %c0_i32, %c0_i32_0 : i32, i32
  }
  func.func @transform_7(%arg0: i32) -> (i32, i32, i32) {
    %c0_i32 = arith.constant 0 : i32
    %c0_i32_0 = arith.constant 0 : i32
    %c0_i32_1 = arith.constant 0 : i32
    %c0_i32_2 = arith.constant 0 : i32
    return %c0_i32, %c0_i32_0, %c0_i32_1 : i32, i32, i32
  }
  func.func @transform_8(%arg0: i32) -> (i32, i32, i32) {
    %c0_i32 = arith.constant 0 : i32
    %c0_i32_0 = arith.constant 0 : i32
    %c0_i32_1 = arith.constant 0 : i32
    %c0_i32_2 = arith.constant 0 : i32
    return %c0_i32, %c0_i32_0, %c0_i32_1 : i32, i32, i32
  }
  func.func @transform_9(%arg0: i32) -> (i32, i32, i32) {
    %c0_i32 = arith.constant 0 : i32
    %c0_i32_0 = arith.constant 0 : i32
    %c0_i32_1 = arith.constant 0 : i32
    %c0_i32_2 = arith.constant 0 : i32
    return %c0_i32, %c0_i32_0, %c0_i32_1 : i32, i32, i32
  }
  func.func @transform_10(%arg0: i32) -> (i32, i32, i32) {
    %c0_i32 = arith.constant 0 : i32
    %c0_i32_0 = arith.constant 0 : i32
    %c0_i32_1 = arith.constant 0 : i32
    %c0_i32_2 = arith.constant 0 : i32
    return %c0_i32, %c0_i32_0, %c0_i32_1 : i32, i32, i32
  }
  func.func @transform_11(%arg0: i32) -> (i32, i32, i32) {
    %c0_i32 = arith.constant 0 : i32
    %c0_i32_0 = arith.constant 0 : i32
    %c0_i32_1 = arith.constant 0 : i32
    %c0_i32_2 = arith.constant 0 : i32
    return %c0_i32, %c0_i32_0, %c0_i32_1 : i32, i32, i32
  }
  func.func @transform_12(%arg0: i32) -> (i32, i32, i32) {
    %c0_i32 = arith.constant 0 : i32
    %c0_i32_0 = arith.constant 0 : i32
    %c0_i32_1 = arith.constant 0 : i32
    %c0_i32_2 = arith.constant 0 : i32
    return %c0_i32, %c0_i32_0, %c0_i32_1 : i32, i32, i32
  }
  func.func @transform_13(%arg0: i32) -> (i32, i32, i32) {
    %c0_i32 = arith.constant 0 : i32
    %c0_i32_0 = arith.constant 0 : i32
    %c0_i32_1 = arith.constant 0 : i32
    %c0_i32_2 = arith.constant 0 : i32
    return %c0_i32, %c0_i32_0, %c0_i32_1 : i32, i32, i32
  }
  func.func @transform_14(%arg0: i32) -> (i32, i32, i32) {
    %c0_i32 = arith.constant 0 : i32
    %c0_i32_0 = arith.constant 0 : i32
    %c0_i32_1 = arith.constant 0 : i32
    %c0_i32_2 = arith.constant 0 : i32
    return %c0_i32, %c0_i32_0, %c0_i32_1 : i32, i32, i32
  }
  func.func @transform_15(%arg0: i32) -> (i32, i32, i32) {
    %c0_i32 = arith.constant 0 : i32
    %c0_i32_0 = arith.constant 0 : i32
    %c0_i32_1 = arith.constant 0 : i32
    %c0_i32_2 = arith.constant 0 : i32
    return %c0_i32, %c0_i32_0, %c0_i32_1 : i32, i32, i32
  }
  func.func @transform_16(%arg0: i32) -> (i32, i32, i32) {
    %c0_i32 = arith.constant 0 : i32
    %c0_i32_0 = arith.constant 0 : i32
    %c0_i32_1 = arith.constant 0 : i32
    %c0_i32_2 = arith.constant 0 : i32
    return %c0_i32, %c0_i32_0, %c0_i32_1 : i32, i32, i32
  }
  func.func @transform_17(%arg0: i32) -> (i32, i32, i32) {
    %c0_i32 = arith.constant 0 : i32
    %c0_i32_0 = arith.constant 0 : i32
    %c0_i32_1 = arith.constant 0 : i32
    %c0_i32_2 = arith.constant 0 : i32
    return %c0_i32, %c0_i32_0, %c0_i32_1 : i32, i32, i32
  }
  func.func @transform_18(%arg0: i32) -> (i32, i32, i32) {
    %c0_i32 = arith.constant 0 : i32
    %c0_i32_0 = arith.constant 0 : i32
    %c0_i32_1 = arith.constant 0 : i32
    return %arg0, %c0_i32, %c0_i32_0 : i32, i32, i32
  }
}

</mosaic_0001>

<bundles_post_ra>
// kernel: tpu_custom_call.1
= control target key start
LH: loop header
LB: loop body
LE: loop exit
PB: predicated region body
PF: predicated region fallthrough
CT: control target
= control target key end

     0   :  { %s2916_s0 = inlined_call_operand.hbm [shape: f32[2,8,32], index: 0, kind: input, shape index: {}]   ;;  %s2917_s1 = inlined_call_operand.vmem [shape: f32[8,32], index: 1, kind: input, shape index: {}]   ;;  %s2918_s2 = inlined_call_operand.hbm [shape: f32[2,8,32], index: 2, kind: input, shape index: {}]   ;;  %s2919_s3 = inlined_call_operand.hbm [shape: f32[2,8,8], index: 3, kind: input, shape index: {}]   ;;  %s2920_s4 = inlined_call_operand.vmem [shape: f32[2,1,8], index: 4, kind: input, shape index: {}]   ;;  %s2921_s5 = inlined_call_operand.vmem [shape: f32[1,32], index: 5, kind: input, shape index: {}]   ;;  %s2922_s6 = inlined_call_operand.hbm [shape: f32[1,32], index: 6, kind: input, shape index: {}]   ;;  %s2923_s7 = inlined_call_operand.vmem [shape: bf16[2,32,96], index: 7, kind: input, shape index: {}]   ;;  %s2924_s8 = inlined_call_operand.vmem [shape: bf16[2,32,32], index: 8, kind: input, shape index: {}]   ;;  %s2925_s9 = inlined_call_operand.vmem [shape: bf16[2,32,32], index: 9, kind: input, shape index: {}]   ;;  %s2926_s10 = inlined_call_operand.hbm [shape: bf16[2,32,64], index: 10, kind: input, shape index: {}]   ;;  %s2927_s11 = inlined_call_operand.hbm [shape: bf16[2,32,32], index: 11, kind: input, shape index: {}]   ;;  %s2928_s12 = inlined_call_operand.vmem [shape: f32[2,3,32], index: 12, kind: input, shape index: {}]   ;;  %s2929_s13 = inlined_call_operand.vmem [shape: f32[2,3,32], index: 13, kind: input, shape index: {}]   ;;  %s2930_s14 = inlined_call_operand.hbm [shape: bf16[2,32,64], index: 14, kind: input, shape index: {}]   ;;  %s2931_s15 = inlined_call_operand.hbm [shape: f32[2,1,64], index: 15, kind: input, shape index: {}]   ;;  %s2932_s16 = inlined_call_operand.vmem [shape: bf16[2,64,32], index: 16, kind: input, shape index: {}]   ;;  %s2933_s17 = inlined_call_operand.hbm [shape: f32[2,1,32], index: 17, kind: input, shape index: {}]   ;;  %s2934_s18 = inlined_call_operand.hbm [shape: f32[2,8,32], index: 18, kind: output, shape index: {}]  }
   0x1   :  { %2954 = sst [smem:[#allocation30_spill]] %s2916_s0 }
   0x2   :  { %2955 = sst [smem:[#allocation31_spill]] %s2917_s1 }
   0x3   :  { %2956 = sst [smem:[#allocation32_spill]] %s2918_s2 }
   0x4   :  { %2957 = sst [smem:[#allocation33_spill]] %s2922_s6 }
   0x5   :  { %2958 = sst [smem:[#allocation34_spill]] %s2923_s7 }
   0x6   :  { %2959 = sst [smem:[#allocation35_spill]] %s2924_s8 }
   0x7   :  { %2960 = sst [smem:[#allocation36_spill]] %s2925_s9 }
   0x8   :  { %2961 = sst [smem:[#allocation37_spill]] %s2926_s10 }
   0x9   :  { %2962 = sst [smem:[#allocation38_spill]] %s2927_s11 }
   0xa   :  { %2963 = sst [smem:[#allocation39_spill]] %s2928_s12 }
   0xb   :  { %2964 = sst [smem:[#allocation40_spill]] %s2929_s13 }
   0xc   :  { %2965 = sst [smem:[#allocation41_spill]] %s2930_s14 }
   0xd   :  { %2966 = sst [smem:[#allocation42_spill]] %s2931_s15 }
   0xe   :  { %2967 = sst [smem:[#allocation43_spill]] %s2932_s16 }
   0xf   :  { %2968 = sst [smem:[#allocation44_spill]] %s2933_s17 }
  0x10   :  { %2969 = sst [smem:[#allocation45_spill]] %s2934_s18 }
  0x11   :  { %23 = vsyncpa [#allocation3], 0 }
  0x12   :  { %25 = vsyncpa [#allocation3 + $0x1], 0 }
  0x13   :  { %26 = vsyncpa [#allocation6], 0 }
  0x14   :  { %28 = vsyncpa [#allocation6 + $0x1], 0 }
  0x15   :  { %29 = vsyncpa [#allocation9], 0 }
  0x16   :  { %30 = vsyncpa [#allocation12], 0 }
  0x17   :  { %31 = vsyncpa [#allocation15], 0 }
  0x18   :  { %32 = vsyncpa [#allocation4], 0 }
  0x19   :  { %34 = vsyncpa [#allocation4 + $0x1], 0  ;;  %s2510_s27 = smov 0   ;;  %s2512_s28 = smov 0  }
  0x1a   :  { %s2514_s29 = smov 0   ;;  %s2516_s30 = smov 0  }
  0x1b LB: > { %2970 = sst [smem:[#allocation24_spill]] %s2375_s27  ;;  %s2534_s20 = sadd.s32 4294967295, %s2387_s30   ;;  %s2387_s30 = sphi %s2516_s30, %s3016_s30   ;;  %s2383_s29 = sphi %s2514_s29, %s3020_s29   ;;  %s2379_s28 = sphi %s2512_s28, %s3019_s28   ;;  %s2375_s27 = sphi %s2510_s27, %s3018_s27  }
  0x1c   : > { %2971 = sst [smem:[#allocation25_spill]] %s2387_s30  ;;  %p1712_p0 = scmp.ge.s32.totalorder %s2387_s30, 1 }
  0x1d   : > { %s2972_s6 = sld [smem:[#allocation33_spill]]  ;;  %p2952_p1 = scmp.eq.s32.totalorder %s2534_s20, 0 }
  0x1e   : > { %p469_p2 = scmp.lt.s32.totalorder %s2387_s30, 3  ;;  %s2397_s22 = smov [#allocation8]  }
  0x1f   : > { %s489_s2 = sshll.u32 %s2397_s22, 4  ;;  %s2974_s11 = sld [smem:[#allocation38_spill]]  ;;  %s490_s2 = int_to_ptr.vmem [resolvable:$true] %s489_s2 }
  0x20   : > { %p2539_p3 = pnand %p1712_p0, %p469_p2  ;;  %s2976_s15 = sld [smem:[#allocation42_spill]] }
  0x21   : > { %s2940_s23 = smov 64   ;;  %s2942_s24 = smov 4  }
  0x22   : > { %p1884_p5 = pneg %p2539_p3  ;;  %s1711_s19 = sadd.s32 4294967294, %s2387_s30  }
  0x23   : > { %s487_s1 = sshll.u32 %s2972_s6, 4  ;;  %s2398_s6 = smov [#allocation11]   ;;  %s488_s1 = int_to_ptr.hbm [resolvable:$true] %s487_s1 }
  0x24   : > { %p2551_p6 = pnand %p1884_p5, %p2952_p1  ;;  %s523_s18 = sshll.u32 %s2398_s6, 4  ;;  %s524_s18 = int_to_ptr.vmem [resolvable:$true] %s523_s18 }
  0x25   : > { %s521_s25 = sshll.u32 %s2974_s11, 4  ;;  %s2401_s6 = smov [#allocation14]   ;;  %s522_s25 = int_to_ptr.hbm [resolvable:$true] %s521_s25 }
  0x26   : > { %s555_s22 = sshll.u32 %s2976_s15, 4  ;;  %s557_s0 = sshll.u32 %s2401_s6, 4  ;;  %s556_s22 = int_to_ptr.hbm [resolvable:$true] %s555_s22  ;;  %s558_s0 = int_to_ptr.vmem [resolvable:$true] %s557_s0 }
  0x27   : > { %1887 = dma.hbm_to_vmem [thread:$0]  (!%p2551_p6), %s488_s1, 16, %s490_s2, [#allocation9]  }
  0x28   : > { %1893 = dma.hbm_to_vmem [thread:$0]  (!%p2551_p6), %s522_s25, 512, %s524_s18, [#allocation12], %s2940_s23, %s2940_s23, %s2942_s24  }
  0x29   : > { %s2938_s1 = smov 16   ;;  %s2939_s2 = smov 1  }
  0x2a   : > { %1899 = dma.hbm_to_vmem [thread:$0]  (!%p2551_p6), %s556_s22, 32, %s558_s0, [#allocation15], %s2938_s1, %s2938_s1, %s2939_s2  }
  0x2b   : > { %s2572_s11 = sadd.s32 1, %s2387_s30   ;;  %s47_s18 = sadd.s32 1, %s2383_s29 }
  0x2c   : > { %2977 = sst [smem:[#allocation26_spill]] %s2572_s11  ;;  %s44_s25 = ssub.s32 %s2387_s30, %s2572_s11 }
  0x2d   : > { %p54_p7 = scmp.ne.s32.totalorder %s2383_s29, %s2379_s28  ;;  %p45_p8 = scmp.eq.s32.totalorder %s44_s25, 0 }
  0x2e   : > { %p55_p9 = scmp.eq.s32.totalorder %s2387_s30, 0  ;;  %p60_p10 = scmp.ne.s32.totalorder %s2379_s28, %s2375_s27 }
  0x2f   : > { %p456_p11 = scmp.eq.s32.totalorder %s2534_s20, 1  ;;  %p462_p2 = scmp.eq.s32.totalorder %s1711_s19, 1 }
  0x30   : > { %s2584_s6 = scalar_select %p45_p8, %s2383_s29, %s47_s18  }
  0x31   : > { %p56_p12 = por %p55_p9, %p54_p7  ;;  %p2588_p13 = por %p2952_p1, %p60_p10 }
  0x32   : > { %2978 = sst [smem:[#allocation27_spill]] %s2584_s6  ;;  %p2592_p0 = por %p456_p11, %p54_p7 }
  0x33   : > { %p1923_p5 = scmp.lt.s32.totalorder %s2387_s30, 2  ;;  %s2950_s1 = sand.u32 1, %s2383_s29  }
  0x34   : > { %s2980_s0 = scalar_select %p2592_p0, 1, 0 }
  0x35   : > { %p2598_p4 = por %p462_p2, %p60_p10  ;;  %s2604_s18 = sshll.u32 %s2950_s1, 3 }
  0x36   : > { %2981 = sst [smem:[#allocation28_spill]] %s2980_s0  ;;  %s2607_s2 = sshll.u32 %s2387_s30, 3 }
  0x37   : > { %s2982_s25 = scalar_select %p2598_p4, 1, 0 }
  0x38   : > { %p2609_p8 = pnand %p1923_p5, %p56_p12  ;;  %s607_s19 = sand.u32 1, %s2387_s30  }
  0x39   : > { %2983 = sst [smem:[#allocation29_spill]] %s2982_s25  ;;  %s611_s27 = scalar_lea.vmem [#allocation5], %s2604_s18 }
  0x3a   : > { %s2985_s6 = sld [smem:[#allocation32_spill]]  ;;  %s619_s25 = sshll.u32 %s611_s27, 4  ;;  %s620_s25 = int_to_ptr.vmem [resolvable:$true] %s619_s25 }
  0x3b   : > { %s2986_s10 = sld [smem:[#allocation37_spill]]  ;;  %s2622_s12 = scalar_lea.sflag [#allocation6], %s607_s19 }
  0x3c   : > { %p2121_p9 = pneg %p2609_p8 }
  0x40   : > { %s615_s11 = scalar_lea.hbm %s2985_s6, %s2607_s2  ;;  %s2124_s27 = scalar_lea.hbm %s2985_s6, 16 }
  0x41   : > { %s617_s0 = sshll.u32 %s615_s11, 4  ;;  %s507_s13 = sshll.u32 %s2986_s10, 4  ;;  %s618_s0 = int_to_ptr.hbm [resolvable:$true] %s617_s0  ;;  %s508_s13 = int_to_ptr.hbm [resolvable:$true] %s507_s13 }
  0x42   : > { %s2117_s9 = sshra.s32 %s618_s0, 4  ;;  %s2118_s9 = int_to_ptr.hbm [resolvable:$true] %s2117_s9 }
  0x43   : > { %s2119_s8 = scalar_lea.hbm %s2118_s9, 8  ;;  %p2125_p12 = scmp.lt.s32.totalorder %s2118_s9, %s2985_s6 }
  0x44   : > { %p2120_p7 = scmp.ne.s32.totalorder %s2118_s9, %s2119_s8  ;;  %p2126_p2 = scmp.lt.s32.totalorder %s2124_s27, %s2119_s8 }
  0x46   : > { %p2122_p10 = pnand %p2121_p9, %p2120_p7  ;;  %p2127_p5 = por %p2126_p2, %p2125_p12 }
  0x48   : > { %p2123_p11 = pneg %p2122_p10 }
  0x4a   : > { %p2128_p1 = pnand %p2127_p5, %p2123_p11 }
  0x4c   : > { %2131 = shalt.err (!%p2128_p1)
}
  0x4d   : > { %1909 = dma.hbm_to_vmem [thread:$0]  (!%p2609_p8), %s618_s0, 128, %s620_s25, %s2622_s12  }
  0x4e   : > { %s2404_s16 = smov [#allocation10]   ;;  %s2987_s14 = sld [smem:[#allocation41_spill]] }
  0x4f   : > { %s509_s1 = sshll.u32 %s2404_s16, 4  ;;  %s2988_s8 = smov 4   ;;  %s510_s1 = int_to_ptr.vmem [resolvable:$true] %s509_s1 }
  0x50   : > { %s2989_s30 = smov 64   ;;  %s2990_s17 = sld [smem:[#allocation44_spill]] }
  0x51   : > { %1890 = dma.hbm_to_vmem [thread:$0]  (!%p2551_p6), %s508_s13, 512, %s510_s1, [#allocation9], %s2989_s30, %s2989_s30, %s2988_s8  }
  0x52   : > { %s2405_s25 = smov [#allocation13]   ;;  %s2406_s16 = smov [#allocation16]  }
  0x53   : > { %s543_s24 = sshll.u32 %s2405_s25, 4  ;;  %s574_s19 = sshll.u32 %s2406_s16, 4  ;;  %s544_s24 = int_to_ptr.vmem [resolvable:$true] %s543_s24  ;;  %s575_s19 = int_to_ptr.vmem [resolvable:$true] %s574_s19 }
  0x54   : > { %s541_s9 = sshll.u32 %s2987_s14, 4  ;;  %s2991_s13 = smov 1   ;;  %s542_s9 = int_to_ptr.hbm [resolvable:$true] %s541_s9 }
  0x55   : > { %1896 = dma.hbm_to_vmem [thread:$0]  (!%p2551_p6), %s542_s9, 512, %s544_s24, [#allocation12], %s2989_s30, %s2989_s30, %s2988_s8  }
  0x56   : > { %s572_s0 = sshll.u32 %s2990_s17, 4  ;;  %s2992_s1 = smov 16   ;;  %s573_s0 = int_to_ptr.hbm [resolvable:$true] %s572_s0 }
  0x57   : > { %1902 = dma.hbm_to_vmem [thread:$0]  (!%p2551_p6), %s573_s0, 32, %s575_s19, [#allocation15], %s2992_s1, %s2992_s1, %s2991_s13  }
  0x58   : > { %s2993_s27 = sld [smem:[#allocation30_spill]]  ;;  %s592_s10 = scalar_lea.vmem [#allocation2], %s2604_s18 }
  0x59   : > { %s600_s14 = sshll.u32 %s592_s10, 4  ;;  %s2995_s7 = sand.u32 1, %s2383_s29   ;;  %s601_s14 = int_to_ptr.vmem [resolvable:$true] %s600_s14 }
  0x5a   : > { %s589_s9 = scalar_lea.sflag [#allocation3], %s2995_s7 }
  0x5e   : > { %s2994_s6 = smov %s2993_s27  ;;  %s596_s25 = scalar_lea.hbm %s2993_s27, %s2607_s2 }
  0x5f   : > { %s598_s17 = sshll.u32 %s596_s25, 4  ;;  %s2244_s24 = scalar_lea.hbm %s2994_s6, 16  ;;  %s599_s17 = int_to_ptr.hbm [resolvable:$true] %s598_s17 }
  0x60   : > { %s2237_s8 = sshra.s32 %s599_s17, 4  ;;  %s2238_s8 = int_to_ptr.hbm [resolvable:$true] %s2237_s8 }
  0x61   : > { %s2239_s30 = scalar_lea.hbm %s2238_s8, 8  ;;  %p2245_p6 = scmp.lt.s32.totalorder %s2238_s8, %s2994_s6 }
  0x62   : > { %p2240_p1 = scmp.ne.s32.totalorder %s2238_s8, %s2239_s30  ;;  %p2246_p11 = scmp.lt.s32.totalorder %s2244_s24, %s2239_s30 }
  0x64   : > { %p2242_p7 = pnand %p2240_p1, %p2121_p9  ;;  %p2247_p12 = por %p2246_p11, %p2245_p6 }
  0x66   : > { %p2243_p10 = pneg %p2242_p7 }
  0x68   : > { %p2248_p2 = pnand %p2247_p12, %p2243_p10 }
  0x6a   : > { %2251 = shalt.err (!%p2248_p2)
}
  0x6b   : > { %1906 = dma.hbm_to_vmem [thread:$0]  (!%p2609_p8), %s599_s17, 128, %s601_s14, %s589_s9  }
  0x6c   : > { %s634_s13 = scalar_lea.hbm %s2919_s3, %s2607_s2  ;;  %s630_s1 = scalar_lea.vmem [#allocation7], %s2604_s18 }
  0x6d   : > { %s638_s15 = sshll.u32 %s630_s1, 4  ;;  %s636_s11 = sshll.u32 %s634_s13, 4  ;;  %s639_s15 = int_to_ptr.vmem [resolvable:$true] %s638_s15  ;;  %s637_s11 = int_to_ptr.hbm [resolvable:$true] %s636_s11 }
  0x6e   : > { %s2267_s27 = sshra.s32 %s637_s11, 4  ;;  %s2274_s14 = scalar_lea.hbm %s2919_s3, 16  ;;  %s2268_s27 = int_to_ptr.hbm [resolvable:$true] %s2267_s27 }
  0x6f   : > { %s2269_s25 = scalar_lea.hbm %s2268_s27, 8  ;;  %p2275_p10 = scmp.lt.s32.totalorder %s2268_s27, %s2919_s3 }
  0x70   : > { %p2270_p5 = scmp.ne.s32.totalorder %s2268_s27, %s2269_s25  ;;  %p2276_p6 = scmp.lt.s32.totalorder %s2274_s14, %s2269_s25 }
  0x72   : > { %p2272_p1 = pnand %p2270_p5, %p2121_p9  ;;  %p2277_p11 = por %p2276_p6, %p2275_p10 }
  0x74   : > { %p2273_p7 = pneg %p2272_p1 }
  0x76   : > { %p2278_p12 = pnand %p2277_p11, %p2273_p7 }
  0x78   : > { %2281 = shalt.err (!%p2278_p12)
}
  0x79   : > { %1912 = dma.hbm_to_vmem [thread:$0]  (!%p2609_p8), %s637_s11, 128, %s639_s15, %s2622_s12  }
  0x7a   : > { %653 = sbr.rel (%p2539_p3) target bundleno = 3542 (0xdd6), region = 92  ;;  %s2697_s2 = sand.u32 (!%p2539_p3), 1, %s2379_s28  }
  0x7b   : > { %s2700_s18 = sshll.u32 (!%p2539_p3), %s2697_s2, 3  ;;  %s656_s26 = scalar_lea.sflag (!%p2539_p3), [#allocation3], %s2697_s2 }
  0x7c   : > { %s659_s0 = scalar_lea.vmem (!%p2539_p3), [#allocation2], %s2700_s18 }
  0x7f   : > { %2350 = dma.done.wait (%p2588_p13), %s656_s26, 128  }
  0x80   : > { %2352 = vsyncadd (%p2588_p13), %s656_s26, 4294967168  ;;  %s665_s12 = sand.u32 1, %s2534_s20   ;;  %s669_s23 = scalar_lea.vmem [#allocation5], %s2700_s18 }
  0x81   : > { %s666_s21 = scalar_lea.sflag [#allocation6], %s665_s12 }
  0x82   : > { %2354 = dma.done.wait (%p2588_p13), %s666_s21, 256  }
  0x83   : > { %2356 = vsyncadd (%p2588_p13), %s666_s21, 4294967040  ;;  %s679_s24 = scalar_lea.vmem [#allocation7], %s2700_s18  ;;  %p2996_p3 = scmp.eq.s32.totalorder %s2534_s20, 0 }
  0x85   : > { %2358 = dma.done.wait (%p2996_p3), [#allocation9], 528   ;;  %p2997_p8 = pmov %p2996_p3 }
  0x86   : > { %p2998_p9 = pmov %p2996_p3 }
  0x87   : > { %2360 = vsyncadd (%p2997_p8), [#allocation9], 4294966768 }
  0x88   : > { %2362 = dma.done.wait (%p2998_p9), [#allocation12], 1024   ;;  %p2999_p2 = pmov %p2996_p3 }
  0x8a   : > { %2364 = vsyncadd (%p2999_p2), [#allocation12], 4294966272  ;;  %p3000_p5 = pmov %p2999_p2 }
  0x8b   : > { %p3001_p1 = pmov %p2999_p2 }
  0x8c   : > { %2366 = dma.done.wait (%p3000_p5), [#allocation15], 64  }
  0x8d   : > { %2368 = vsyncadd (%p3001_p1), [#allocation15], 4294967232  ;;  %p776_p13 = scmp.lt.s32.totalorder %s2534_s20, 1  ;;  %v2732_v0 = vld [vmem:[%s669_s23] sm:$0xff]  ;;  %v825_v1 = vld [vmem:[%s679_s24] sm:$0xff]  ;;  %vm785_vm0 = vcmask 261120  }
  0x8e   : > { %v824_v3 = vpack.c.bf16 %v2732_v0, %v2732_v0  ;;  %vm826_vm1 = vcmp.gt.f32.partialorder %v825_v1, 0.0  ;;  %v780_v4 = vld [vmem:[%s659_s0] sm:$0xff]  ;;  %s3002_s1 = sld [smem:[#allocation31_spill]]  ;;  %v2407_v6 = vmov -1e+09   ;;  %v2408_v11 = vmov 32.0  }
  0x8f   : > { %s777_s22 = scalar_select %p776_p13, %s2534_s20, 1  ;;  %v2739_v7 = vsel %vm826_vm1, 0.0, %v2407_v6  ;;  %1999 = vrcp.f32 %v2408_v11  ;;  %v1997_v32 = vld [vmem:[%s2921_s5] ss:$0 sm:$0xff]  ;;  %v1998_v34 = vld [vmem:[#allocation8] ss:$0 sm:$0xff] }
  0x90   : > { %s775_s27 = scalar_lea.vmem [#allocation17], %s2700_s18  ;;  %s2755_s25 = smov 0  }
  0x91   : > { %s778_s7 = scalar_lea.vmem %s2920_s4, %s777_s22 }
  0x92   : > { %v828_v2 = vld [vmem:[%s778_s7] sm:$0x1] }
  0x93   : > { %vm829_vm2 = vcmp.gt.f32.partialorder %v828_v2, 0.0 }
  0x94   : > { %v781_v5 = vld [vmem:[%s3002_s1] sm:$0xff]  ;;  %v2741_v8 = vsel %vm829_vm2, 0.0, %v2407_v6 }
  0x95   : > { %v782_v9 = vadd.f32 %v781_v5, %v780_v4  ;;  %v2000_v12 = vpop.eup %1999 }
  0x96   : > { %v790_v13 = vmul.f32 32.0, %v2000_v12  ;;  %vm794_vm3 = vweird.f32 %v2000_v12 }
  0x97   : > { %v786_v10 = vsel %vm785_vm0, %v782_v9, 0.0 }
  0x98   : > { %787 = vadd.xlane.f32.xlu0 %v786_v10  ;;  %v791_v14 = vsub.f32 1.0, %v790_v13 }
  0x9a   : > { %v792_v15 = vmul.f32 %v2000_v12, %v791_v14 }
  0x9c   : > { %v793_v16 = vadd.f32 %v2000_v12, %v792_v15 }
  0x9e   : > { %v2744_v17 = vsel %vm794_vm3, %v2000_v12, %v793_v16 }
 0x10b   : > { %v788_v18 = vpop.xlane.xlu0 %787 }
 0x10c   : > { %v796_v19 = vmul.f32 %v2744_v17, %v788_v18 }
 0x10e   : > { %v797_v20 = vsub.f32 %v782_v9, %v796_v19 }
 0x110   : > { %v798_v21 = vmul.f32 %v797_v20, %v797_v20 }
 0x112   : > { %v799_v22 = vsel %vm785_vm0, %v798_v21, 0.0 }
 0x113   : > { %800 = vadd.xlane.f32.xlu0 %v799_v22 }
 0x186   : > { %v801_v23 = vpop.xlane.xlu0 %800 }
 0x187   : > { %v802_v24 = vmul.f32 %v801_v23, %v2744_v17 }
 0x189   : > { %v803_v25 = vadd.f32 1e-06, %v802_v24 }
 0x18b   : > { %2001 = vrsqrt.f32 %v803_v25  ;;  %vm810_vm5 = vweird.f32 %v803_v25 }
 0x191   : > { %v2002_v26 = vpop.eup %2001 }
 0x192   : > { %v805_v27 = vmul.f32 %v2002_v26, %v803_v25  ;;  %vm811_vm4 = vweird.f32 %v2002_v26 }
 0x193   : > { %vm812_vm6 = vmor %vm810_vm5, %vm811_vm4 }
 0x194   : > { %v806_v28 = vmul.f32 %v2002_v26, %v805_v27 }
 0x196   : > { %v807_v29 = vmul.f32 0.5, %v806_v28 }
 0x198   : > { %v808_v30 = vsub.f32 1.5, %v807_v29 }
 0x19a   : > { %v809_v31 = vmul.f32 %v2002_v26, %v808_v30 }
 0x19c   : > { %v813_v33 = vsel %vm812_vm6, %v2002_v26, %v809_v31 }
 0x19d   : > { %v814_v35 = vmul.f32 %v813_v33, %v797_v20 }
 0x19f   : > { %v818_v36 = vmul.f32 %v1997_v32, %v814_v35 }
 0x1a1   : > { %v822_v37 = vadd.f32 %v1998_v34, %v818_v36  }
 0x1a2 LB: >> { %s2764_s8 = sshll.u32 %s2395_s25, 4  ;;  %s3003_s17 = sld [smem:[#allocation34_spill]]  ;;  %v843_v40 = vpack.c.bf16 %v2391_v37, %v2391_v37  ;;  %vm888_vm7 = vcmask 130048   ;;  %vm908_vm8 = vcmask 64512   ;;  %vm939_vm9 = vcmask 1043456   ;;  %s2395_s25 = sphi %s2755_s25, %s836_s25   ;;  %v2391_v37 = vphi %v822_v37, %v3009_v37  }
 0x1a3   : >> { %s2409_s26 = smov 112   ;;  %s2410_s0 = smov 96  }
 0x1a4   : >> { %s2411_s12 = smov 80   ;;  %s2412_s21 = smov 64  }
 0x1a5   : >> { %s2413_s23 = smov 48   ;;  %s3004_s16 = sld [smem:[#allocation35_spill]] }
 0x1a6   : >> { %s2414_s7 = smov 16   ;;  %s1121_s10 = scalar_lea.vmem [#allocation10], %s2764_s8 }
 0x1a7   : >> { %s3005_s15 = sld [smem:[#allocation36_spill]]  ;;  %s1737_s30 = sshll.u32 %s2395_s25, 2 }
 0x1a8   : >> { %s845_s9 = scalar_lea.vmem %s3003_s17, %s2764_s8  ;;  %s3007_s22 = sld [smem:[#allocation40_spill]] }
 0x1a9   : >> { %v1831_v38 = vld [vmem:[%s845_s9 + $0x8] sm:$0xff]  ;;  %v1830_v39 = vld [vmem:[%s845_s9] sm:$0xff]  ;;  %s3006_s9 = sld [smem:[#allocation39_spill]] }
 0x1aa   : >> { %871 = vmatpush.bf16.msra.mxu0 %v1831_v38  ;;  %s3008_s13 = sld [smem:[#allocation43_spill]] }
 0x1ab   : >> { %s879_s19 = scalar_lea.vmem %s3004_s16, %s2764_s8 }
 0x1ad   : >> { %s1087_s11 = scalar_lea.vmem %s3005_s15, %s2764_s8 }
 0x1ae   : >> { %872 = vmatpush.bf16.msra.mxu0 %v1830_v39  ;;  %v1834_v39 = vld [vmem:[%s879_s19 + $0x8] sm:$0xff]  ;;  %s841_s16 = scalar_lea.vmem %s3007_s22, %s1737_s30 }
 0x1b1   : >> { %1747 = vmatmul.msk.bf16.vlgmr.msra.gmra.mxu0 %vm785_vm0, %v843_v40  ;;  %v1833_v40 = vld [vmem:[%s879_s19] sm:$0xff]  ;;  %s1847_s19 = sshll.u32 %s2395_s25, 5 }
 0x1b2   : >> { %1052 = vmatpush.bf16.msrb.mxu0 %v1834_v39  ;;  %s1405_s1 = scalar_lea.vmem %s3008_s13, %s1847_s19 }
 0x1b6   : >> { %1053 = vmatpush.bf16.msrb.mxu0 %v1833_v40 }
 0x22e   : >> { %v874_v41 = vpop.f32.mrf.mxu0 }
 0x22f   : >> { %v884_v42 = vpack.c.bf16 %v874_v41, %v874_v41 }
 0x231   : >> { %956 = vrot.lane.b32.xlu1 %v884_v42, %s2409_s26  ;;  %886 = vrot.lane.b32.xlu0 %v884_v42, %s2410_s0 }
 0x236   : >> { %v876_v43 = vpop.f32.mrf.mxu0 }
 0x239   : >> { %958 = vrot.lane.b32.xlu0 %v884_v42, %s2411_s12 }
 0x2a3   : >> { %v887_v44 = vpop.permute.xlu0 %886  ;;  %v957_v48 = vpop.permute.xlu1 %956 }
 0x2a4   : >> { %v893_v45 = vsel %vm888_vm7, %v887_v44, 0 }
 0x2a5   : >> { %902 = vmatpush.bf16.xpose.msra.mxu1 %v893_v45 }
 0x2ab   : >> { %v959_v46 = vpop.permute.xlu0 %958 }
 0x2ac   : >> { %1749 = vmatmul.msk.bf16.vlgmr.msra.gmra.mxu1 %vm888_vm7, %v884_v42  ;;  %v964_v47 = vsel %vm888_vm7, %v959_v46, 0 }
 0x2ad   : >> { %973 = vmatpush.bf16.xpose.msra.mxu3 %v964_v47 }
 0x2b4   : >> { %1751 = vmatmul.msk.bf16.vlgmr.msra.gmra.mxu3 %vm888_vm7, %v957_v48 }
 0x329   : >> { %v904_v49 = vpop.f32.mrf.mxu1 }
 0x32a   : >> { %v905_v50 = vadd.f32 %v904_v49, %v2739_v7 }
 0x32c   : >> { %v909_v51 = vsel %vm908_vm8, %v905_v50, -inf }
 0x32d   : >> { %910 = vmax.xlane.f32.xlu1 %v909_v51 }
 0x331   : >> { %v906_v52 = vpop.f32.mrf.mxu1 }
 0x332   : >> { %v1840_v52 = vld [vmem:[%s1121_s10 + $0x8] sm:$0xff] }
 0x333   : >> { %1147 = vmatpush.bf16.msrb.mxu3 %v1840_v52 }
 0x337   : >> { %v975_v53 = vpop.f32.mrf.mxu3 }
 0x338   : >> { %v976_v54 = vadd.f32 %v975_v53, %v2739_v7 }
 0x33a   : >> { %v979_v55 = vsel %vm908_vm8, %v976_v54, -inf }
 0x33b   : >> { %980 = vmax.xlane.f32.xlu2 %v979_v55 }
 0x33f   : >> { %v977_v56 = vpop.f32.mrf.mxu3 }
 0x3a0   : >> { %v911_v57 = vpop.xlane.xlu1 %910 }
 0x3a1   : >> { %v912_v58 = vsub.f32 %v905_v50, %v911_v57 }
 0x3a3   : >> { %v913_v59 = vmul.f32 1.442695, %v912_v58  ;;  %v1839_v58 = vld [vmem:[%s1121_s10] sm:$0xff] }
 0x3a4   : >> { %1148 = vmatpush.bf16.msrb.mxu3 %v1839_v58 }
 0x3a5   : >> { %2005 = vpow2.f32 %v913_v59  ;;  %v1836_v59 = vld [vmem:[%s1087_s11] sm:$0xff] }
 0x3a7   : >> { %1781 = vmatmul.msk.bf16.vlgmr.msrb.gmra.mxu3 %vm785_vm0, %v824_v3 }
 0x3ab   : >> { %v2006_v60 = vpop.eup %2005 }
 0x3ac   : >> { %v915_v61 = vsel %vm908_vm8, %v2006_v60, 0.0 }
 0x3ad   : >> { %916 = vadd.xlane.f32.xlu2 %v915_v61 }
 0x3ae   : >> { %v981_v62 = vpop.xlane.xlu2 %980 }
 0x3af   : >> { %v982_v63 = vsub.f32 %v976_v54, %v981_v62 }
 0x3b1   : >> { %v983_v1 = vmul.f32 1.442695, %v982_v63 }
 0x3b3   : >> { %2007 = vpow2.f32 %v983_v1 }
 0x3b9   : >> { %v2008_v2 = vpop.eup %2007 }
 0x3ba   : >> { %v985_v4 = vsel %vm908_vm8, %v2008_v2, 0.0 }
 0x3bb   : >> { %986 = vadd.xlane.f32.xlu0 %v985_v4 }
 0x3c5   : >> { %934 = vrot.lane.b32.xlu2 %v884_v42, %s2412_s21  ;;  %s839_s21 = scalar_lea.vmem %s3006_s9, %s1737_s30 }
 0x3cd   : >> { %1004 = vrot.lane.b32.xlu2 %v884_v42, %s2413_s23 }
 0x420   : >> { %v917_v5 = vpop.xlane.xlu2 %916 }
 0x421   : >> { %2009 = vrcp.f32 %v917_v5  ;;  %v929_v13 = vand.u32 2147483648, %v917_v5  ;;  %v927_v15 = vand.u32 2147483647, %v917_v5  ;;  %vm923_vm11 = vweird.f32 %v917_v5 }
 0x423   : >> { %v930_v19 = vor.u32 1.1754944e-38, %v929_v13  ;;  %vm928_vm13 = vcmp.eq.f32.partialorder %v927_v15, 8.507059e+37 }
 0x427   : >> { %v2010_v6 = vpop.eup %2009 }
 0x428   : >> { %v919_v9 = vmul.f32 %v2010_v6, %v917_v5  ;;  %v935_v10 = vpop.permute.xlu2 %934  ;;  %vm924_vm10 = vweird.f32 %v2010_v6 }
 0x429   : >> { %v941_v11 = vsel %vm939_vm9, %v935_v10, 0  ;;  %vm925_vm12 = vmor %vm923_vm11, %vm924_vm10  ;;  %v2820_v10 = vld [vmem:[%s841_s16] sm:$0x7] }
 0x42a   : >> { %v920_v12 = vsub.f32 1.0, %v919_v9  ;;  %950 = vmatpush.bf16.msra.mxu2 %v941_v11 }
 0x42c   : >> { %v921_v14 = vmul.f32 %v2010_v6, %v920_v12 }
 0x42e   : >> { %v987_v16 = vpop.xlane.xlu0 %986  ;;  %v922_v18 = vadd.f32 %v2010_v6, %v921_v14  ;;  %v1083_v14 = vperm.slane %v2820_v10, 0 }
 0x42f   : >> { %2011 = vrcp.f32 %v987_v16  ;;  %v999_v29 = vand.u32 2147483648, %v987_v16  ;;  %v997_v31 = vand.u32 2147483647, %v987_v16  ;;  %vm993_vm15 = vweird.f32 %v987_v16 }
 0x430   : >> { %v1005_v20 = vpop.permute.xlu2 %1004  ;;  %v926_v21 = vsel %vm925_vm12, %v2010_v6, %v922_v18  ;;  %v2818_v6 = vld [vmem:[%s839_s21] sm:$0x7] }
 0x431   : >> { %v1010_v22 = vsel %vm939_vm9, %v1005_v20, 0  ;;  %v931_v23 = vsel %vm928_vm13, %v930_v19, %v926_v21  ;;  %v1000_v33 = vor.u32 1.1754944e-38, %v999_v29  ;;  %vm998_vm2 = vcmp.eq.f32.partialorder %v997_v31, 8.507059e+37  ;;  %v1150_v19 = vpop.f32.mrf.mxu3 }
 0x432   : >> { %1019 = vmatpush.bf16.msrb.mxu2 %v1010_v22  ;;  %v932_v24 = vmul.f32 %v2006_v60, %v931_v23  ;;  %v1081_v11 = vperm.slane %v2818_v6, 0  ;;  %v1161_v20 = vpack.c.bf16 %v1150_v19, %v1150_v19  ;;  %v1163_v29 = vperm.slane %v2741_v8, 0 }
 0x434   : >> { %v933_v25 = vpack.c.bf16 %v932_v24, %v932_v24  ;;  %1234 = vrot.lane.b32.xlu0 %v1161_v20, %s2409_s26  ;;  %v1169_v21 = vsel %vm888_vm7, %v1161_v20, 0 }
 0x435   : >> { %v2012_v26 = vpop.eup %2011 }
 0x436   : >> { %v989_v27 = vmul.f32 %v2012_v26, %v987_v16  ;;  %1750 = vmatmul.msk.bf16.vlgmr.msra.gmra.mxu2 %vm908_vm8, %v933_v25  ;;  %vm994_vm14 = vweird.f32 %v2012_v26 }
 0x437   : >> { %vm995_vm1 = vmor %vm993_vm15, %vm994_vm14  ;;  %1178 = vmatpush.bf16.xpose.msra.mxu2 %v1169_v21 }
 0x438   : >> { %v990_v28 = vsub.f32 1.0, %v989_v27 }
 0x439   : >> { %v1152_v22 = vpop.f32.mrf.mxu3 }
 0x43a   : >> { %v991_v30 = vmul.f32 %v2012_v26, %v990_v28 }
 0x43c   : >> { %v992_v32 = vadd.f32 %v2012_v26, %v991_v30 }
 0x43e   : >> { %v996_v34 = vsel %vm995_vm1, %v2012_v26, %v992_v32 }
 0x43f   : >> { %v1001_v35 = vsel %vm998_vm2, %v1000_v33, %v996_v34  ;;  %vm1443_vm2 = vcmask 523264  }
 0x440   : >> { %v1002_v36 = vmul.f32 %v2008_v2, %v1001_v35 }
 0x442   : >> { %v1003_v38 = vpack.c.bf16 %v1002_v36, %v1002_v36 }
 0x446   : >> { %1752 = vmatmul.msk.bf16.vlgmr.msrb.gmra.mxu2 %vm908_vm8, %v1003_v38 }
 0x4a6   : >> { %v1235_v26 = vpop.permute.xlu0 %1234 }
 0x4a7   : >> { %v1240_v27 = vsel %vm888_vm7, %v1235_v26, 0 }
 0x4b9   : >> { %v952_v41 = vpop.f32.mrf.mxu2 }
 0x4c1   : >> { %v954_v42 = vpop.f32.mrf.mxu2 }
 0x4c9   : >> { %v1021_v43 = vpop.f32.mrf.mxu2 }
 0x4ca   : >> { %1026 = vrot.lane.b32.xlu2 %v1021_v43, %s2414_s7 }
 0x4d1   : >> { %v1023_v44 = vpop.f32.mrf.mxu2 }
 0x524   : >> { %v1027_v45 = vpop.permute.xlu2 %1026 }
 0x525   : >> { %v1029_v46 = vsel %vm888_vm7, %v952_v41, %v1027_v45 }
 0x526   : >> { %v1030_v47 = vpack.c.bf16 %v1029_v46, %v1029_v46 }
 0x528   : >> { %1761 = vmatmul.msk.bf16.vlgmr.msrb.gmra.mxu0 %vm785_vm0, %v1030_v47 }
 0x5a5   : >> { %v1055_v48 = vpop.f32.mrf.mxu0 }
 0x5a6   : >> { %v1056_v49 = vadd.f32 %v2391_v37, %v1055_v48  ;;  %v1837_v37 = vld [vmem:[%s1087_s11 + $0x8] sm:$0xff] }
 0x5a7   : >> { %1113 = vmatpush.bf16.msrb.mxu1 %v1837_v37 }
 0x5a8   : >> { %v1059_v50 = vsel %vm785_vm0, %v1056_v49, 0.0 }
 0x5a9   : >> { %1060 = vadd.xlane.f32.xlu1 %v1059_v50 }
 0x5ab   : >> { %1114 = vmatpush.bf16.msrb.mxu1 %v1836_v59 }
 0x5ad   : >> { %v1057_v51 = vpop.f32.mrf.mxu0 }
 0x5af   : >> { %1249 = vmatpush.bf16.xpose.msra.mxu1 %v1240_v27 }
 0x61c   : >> { %v1061_v53 = vpop.xlane.xlu1 %1060 }
 0x61d   : >> { %v1062_v54 = vmul.f32 %v1061_v53, %v2744_v17 }
 0x61f   : >> { %v1063_v55 = vsub.f32 %v1056_v49, %v1062_v54 }
 0x621   : >> { %v1064_v56 = vmul.f32 %v1063_v55, %v1063_v55 }
 0x623   : >> { %v1065_v57 = vsel %vm785_vm0, %v1064_v56, 0.0 }
 0x624   : >> { %1066 = vadd.xlane.f32.xlu2 %v1065_v57 }
 0x697   : >> { %v1067_v60 = vpop.xlane.xlu2 %1066 }
 0x698   : >> { %v1068_v61 = vmul.f32 %v1067_v60, %v2744_v17 }
 0x69a   : >> { %v1069_v62 = vadd.f32 1e-06, %v1068_v61 }
 0x69c   : >> { %2013 = vrsqrt.f32 %v1069_v62  ;;  %vm1076_vm4 = vweird.f32 %v1069_v62 }
 0x6a2   : >> { %v2014_v63 = vpop.eup %2013 }
 0x6a3   : >> { %v1071_v1 = vmul.f32 %v2014_v63, %v1069_v62  ;;  %vm1077_vm3 = vweird.f32 %v2014_v63 }
 0x6a4   : >> { %vm1078_vm5 = vmor %vm1076_vm4, %vm1077_vm3 }
 0x6a5   : >> { %v1072_v2 = vmul.f32 %v2014_v63, %v1071_v1 }
 0x6a7   : >> { %v1073_v4 = vmul.f32 0.5, %v1072_v2 }
 0x6a9   : >> { %v1074_v5 = vsub.f32 1.5, %v1073_v4 }
 0x6ab   : >> { %v1075_v9 = vmul.f32 %v2014_v63, %v1074_v5 }
 0x6ad   : >> { %v1079_v12 = vsel %vm1078_vm5, %v2014_v63, %v1075_v9 }
 0x6ae   : >> { %v1080_v13 = vmul.f32 %v1079_v12, %v1063_v55 }
 0x6b0   : >> { %v1082_v15 = vmul.f32 %v1081_v11, %v1080_v13 }
 0x6b2   : >> { %v2824_v16 = vadd.f32 %v1083_v14, %v1082_v15 }
 0x6b4   : >> { %v1085_v18 = vpack.c.bf16 %v2824_v16, %v2824_v16 }
 0x6b6   : >> { %1771 = vmatmul.msk.bf16.vlgmr.msrb.gmra.mxu1 %vm785_vm0, %v1085_v18 }
 0x733   : >> { %v1116_v23 = vpop.f32.mrf.mxu1 }
 0x734   : >> { %v1160_v24 = vpack.c.bf16 %v1116_v23, %v1116_v23 }
 0x736   : >> { %1232 = vrot.lane.b32.xlu1 %v1160_v24, %s2409_s26  ;;  %1783 = vmatmul.msk.bf16.vlgmr.msra.gmra.mxu2 %vm888_vm7, %v1160_v24  ;;  %s1155_s26 = scalar_lea.vmem [#allocation11], %s2764_s8 }
 0x737   : >> { %v1843_v24 = vld [vmem:[%s1155_s26 + $0x8] sm:$0xff] }
 0x738   : >> { %1328 = vmatpush.bf16.msrb.mxu2 %v1843_v24 }
 0x73b   : >> { %v1118_v25 = vpop.f32.mrf.mxu1 }
 0x73c   : >> { %v1842_v25 = vld [vmem:[%s1155_s26] sm:$0xff] }
 0x73d   : >> { %1329 = vmatpush.bf16.msrb.mxu2 %v1842_v25 }
 0x7a8   : >> { %v1233_v28 = vpop.permute.xlu1 %1232 }
 0x7a9   : >> { %1785 = vmatmul.msk.bf16.vlgmr.msra.gmra.mxu1 %vm888_vm7, %v1233_v28 }
 0x7b9   : >> { %v1180_v30 = vpop.f32.mrf.mxu2 }
 0x7ba   : >> { %v1181_v31 = vadd.f32 %v1180_v30, %v1163_v29 }
 0x7bc   : >> { %v1184_v32 = vsel %vm908_vm8, %v1181_v31, -inf }
 0x7bd   : >> { %1185 = vmax.xlane.f32.xlu1 %v1184_v32 }
 0x7c1   : >> { %v1182_v33 = vpop.f32.mrf.mxu2 }
 0x7d6   : >> { %1210 = vrot.lane.b32.xlu1 %v1161_v20, %s2410_s0  ;;  %s1368_s0 = scalar_lea.vmem [#allocation14], %s2395_s25 }
 0x826   : >> { %v1251_v34 = vpop.f32.mrf.mxu1 }
 0x827   : >> { %v1252_v35 = vadd.f32 %v1251_v34, %v1163_v29 }
 0x829   : >> { %v1255_v36 = vsel %vm908_vm8, %v1252_v35, -inf }
 0x82a   : >> { %1256 = vmax.xlane.f32.xlu0 %v1255_v36 }
 0x82e   : >> { %v1253_v38 = vpop.f32.mrf.mxu1 }
 0x830   : >> { %v1186_v39 = vpop.xlane.xlu1 %1185 }
 0x831   : >> { %v1187_v40 = vsub.f32 %v1181_v31, %v1186_v39 }
 0x833   : >> { %v1188_v41 = vmul.f32 1.442695, %v1187_v40 }
 0x835   : >> { %2015 = vpow2.f32 %v1188_v41 }
 0x83b   : >> { %v2016_v42 = vpop.eup %2015 }
 0x83c   : >> { %v1190_v43 = vsel %vm908_vm8, %v2016_v42, 0.0 }
 0x83d   : >> { %1191 = vadd.xlane.f32.xlu0 %v1190_v43 }
 0x848   : >> { %v1211_v44 = vpop.permute.xlu1 %1210 }
 0x849   : >> { %v1216_v45 = vsel %vm939_vm9, %v1211_v44, 0 }
 0x84a   : >> { %1225 = vmatpush.bf16.msra.mxu0 %v1216_v45  ;;  %v1850_v45 = vld [vmem:[%s1405_s1 + $0x10] sm:$0xff] }
 0x89d   : >> { %v1257_v46 = vpop.xlane.xlu0 %1256 }
 0x89e   : >> { %v1258_v47 = vsub.f32 %v1252_v35, %v1257_v46 }
 0x8a0   : >> { %v1259_v48 = vmul.f32 1.442695, %v1258_v47 }
 0x8a2   : >> { %2017 = vpow2.f32 %v1259_v48 }
 0x8a8   : >> { %v2018_v49 = vpop.eup %2017 }
 0x8a9   : >> { %v1261_v50 = vsel %vm908_vm8, %v2018_v49, 0.0 }
 0x8aa   : >> { %1262 = vadd.xlane.f32.xlu2 %v1261_v50 }
 0x8b0   : >> { %v1192_v51 = vpop.xlane.xlu0 %1191 }
 0x8b1   : >> { %2019 = vrcp.f32 %v1192_v51  ;;  %v1204_v55 = vand.u32 2147483648, %v1192_v51  ;;  %v1202_v57 = vand.u32 2147483647, %v1192_v51  ;;  %vm1198_vm10 = vweird.f32 %v1192_v51 }
 0x8b3   : >> { %v1205_v37 = vor.u32 1.1754944e-38, %v1204_v55  ;;  %vm1203_vm12 = vcmp.eq.f32.partialorder %v1202_v57, 8.507059e+37 }
 0x8b7   : >> { %v2020_v52 = vpop.eup %2019 }
 0x8b8   : >> { %v1194_v53 = vmul.f32 %v2020_v52, %v1192_v51  ;;  %vm1199_vm6 = vweird.f32 %v2020_v52 }
 0x8b9   : >> { %vm1200_vm11 = vmor %vm1198_vm10, %vm1199_vm6 }
 0x8ba   : >> { %v1195_v54 = vsub.f32 1.0, %v1194_v53  ;;  %v1357_v53 = vperm.slane %v2818_v6, 1 }
 0x8bc   : >> { %v1196_v56 = vmul.f32 %v2020_v52, %v1195_v54 }
 0x8be   : >> { %v1197_v58 = vadd.f32 %v2020_v52, %v1196_v56  ;;  %v1359_v56 = vperm.slane %v2820_v10, 1 }
 0x8c0   : >> { %v1201_v59 = vsel %vm1200_vm11, %v2020_v52, %v1197_v58 }
 0x8c1   : >> { %v1206_v60 = vsel %vm1203_vm12, %v1205_v37, %v1201_v59  ;;  %v1849_v59 = vld [vmem:[%s1405_s1 + $0x8] sm:$0xff] }
 0x8c2   : >> { %v1207_v61 = vmul.f32 %v2016_v42, %v1206_v60  ;;  %1280 = vrot.lane.b32.xlu2 %v1161_v20, %s2411_s12  ;;  %s1363_s12 = scalar_lea.vmem [#allocation13], %s2764_s8  ;;  %s1414_s8 = scalar_lea.vmem [#allocation16], %s2395_s25  ;;  %v1848_v60 = vld [vmem:[%s1405_s1] sm:$0xff] }
 0x8c3   : >> { %v1846_v41 = vld [vmem:[%s1363_s12 + $0x8] sm:$0xff]  ;;  %v1845_v42 = vld [vmem:[%s1363_s12] sm:$0xff]  ;;  %s836_s25 = sadd.s32 1, %s2395_s25  }
 0x8c4   : >> { %v1208_v62 = vpack.c.bf16 %v1207_v61, %v1207_v61  ;;  %1394 = vmatpush.bf16.msrb.mxu0 %v1846_v41  ;;  %v2003_v61 = vld [vmem:[%s1368_s0] ss:$0 sm:$0xff]  ;;  %p833_p7 = scmp.ge.s32.totalorder %s836_s25, 2  }
 0x8c5   : > { %s1826_s11 = sshll.u32 (%p833_p7), %s2534_s20, 3  ;;  %s3011_s17 = sld [smem:[#allocation45_spill]] (%p833_p7) }
 0x8c6   : >> { %1784 = vmatmul.msk.bf16.vlgmr.msra.gmra.mxu0 %vm908_vm8, %v1208_v62  ;;  %s1501_s21 = sshll.u32 (%p833_p7), %s775_s27, 4  ;;  %s1489_s25 = scalar_lea.sflag (%p833_p7), [#allocation4], %s2697_s2  ;;  %s1502_s21 = int_to_ptr.vmem [resolvable:$true] %s1501_s21 }
 0x8c8   : >> { %1395 = vmatpush.bf16.msrb.mxu0 %v1845_v42 }
 0x8cb   : > { %s1499_s9 = scalar_lea.hbm (%p833_p7), %s3011_s17, %s1826_s11  ;;  %s2317_s20 = scalar_lea.hbm (%p833_p7), %s3011_s17, 16 }
 0x8cc   : > { %s1503_s23 = sshll.u32 (%p833_p7), %s1499_s9, 4  ;;  %s1504_s23 = int_to_ptr.hbm [resolvable:$true] %s1503_s23 }
 0x8cd   : > { %s2311_s24 = sshra.s32 (%p833_p7), %s1504_s23, 4  ;;  %s2312_s24 = int_to_ptr.hbm [resolvable:$true] %s2311_s24 }
 0x8ce   : > { %s2313_s22 = scalar_lea.hbm (%p833_p7), %s2312_s24, 8  ;;  %p2318_p12 = scmp.lt.s32.totalorder (%p833_p7), %s2312_s24, %s3011_s17 }
 0x8cf   : > { %p2314_p10 = scmp.ne.s32.totalorder (%p833_p7), %s2312_s24, %s2313_s22  ;;  %p2319_p3 = scmp.lt.s32.totalorder (%p833_p7), %s2317_s20, %s2313_s22 }
 0x8d1   : > { %p2315_p6 = pnand (%p833_p7), %p2314_p10, %p2592_p0  ;;  %p2320_p8 = por (%p833_p7), %p2319_p3, %p2318_p12 }
 0x8d3   : > { %p2316_p11 = pneg (%p833_p7), %p2315_p6 }
 0x8d5   : > { %p2321_p9 = pnand (%p833_p7), %p2320_p8, %p2316_p11 }
 0x91d   : >> { %v1263_v63 = vpop.xlane.xlu2 %1262 }
 0x91e   : >> { %2021 = vrcp.f32 %v1263_v63  ;;  %v1275_v11 = vand.u32 2147483648, %v1263_v63  ;;  %v1273_v13 = vand.u32 2147483647, %v1263_v63  ;;  %vm1269_vm14 = vweird.f32 %v1263_v63 }
 0x920   : >> { %v1276_v15 = vor.u32 1.1754944e-38, %v1275_v11  ;;  %vm1274_vm1 = vcmp.eq.f32.partialorder %v1273_v13, 8.507059e+37 }
 0x924   : >> { %v2022_v1 = vpop.eup %2021 }
 0x925   : >> { %v1265_v2 = vmul.f32 %v2022_v1, %v1263_v63  ;;  %v1281_v4 = vpop.permute.xlu2 %1280  ;;  %vm1270_vm13 = vweird.f32 %v2022_v1 }
 0x926   : >> { %v1286_v5 = vsel %vm939_vm9, %v1281_v4, 0  ;;  %vm1271_vm15 = vmor %vm1269_vm14, %vm1270_vm13 }
 0x927   : >> { %v1266_v9 = vsub.f32 1.0, %v1265_v2  ;;  %1295 = vmatpush.bf16.msra.mxu3 %v1286_v5  ;;  %v2004_v5 = vld [vmem:[%s1414_s8] ss:$0 sm:$0xff] }
 0x929   : >> { %v1267_v12 = vmul.f32 %v2022_v1, %v1266_v9 }
 0x92b   : >> { %v1268_v14 = vadd.f32 %v2022_v1, %v1267_v12 }
 0x92d   : >> { %v1272_v18 = vsel %vm1271_vm15, %v2022_v1, %v1268_v14 }
 0x92e   : >> { %v1277_v19 = vsel %vm1274_vm1, %v1276_v15, %v1272_v18 }
 0x92f   : >> { %v1278_v20 = vmul.f32 %v2018_v49, %v1277_v19 }
 0x931   : >> { %v1279_v21 = vpack.c.bf16 %v1278_v20, %v1278_v20 }
 0x933   : >> { %1786 = vmatmul.msk.bf16.vlgmr.msra.gmra.mxu3 %vm908_vm8, %v1279_v21 }
 0x943   : >> { %v1227_v22 = vpop.f32.mrf.mxu0 }
 0x94b   : >> { %v1229_v23 = vpop.f32.mrf.mxu0 }
 0x9b6   : >> { %v1297_v26 = vpop.f32.mrf.mxu3 }
 0x9b7   : >> { %1302 = vrot.lane.b32.xlu0 %v1297_v26, %s2414_s7 }
 0x9be   : >> { %v1299_v27 = vpop.f32.mrf.mxu3 }
 0xa29   : >> { %v1303_v28 = vpop.permute.xlu0 %1302 }
 0xa2a   : >> { %v1305_v29 = vsel %vm888_vm7, %v1227_v22, %v1303_v28 }
 0xa2b   : >> { %v1306_v30 = vpack.c.bf16 %v1305_v29, %v1305_v29 }
 0xa2d   : >> { %1795 = vmatmul.msk.bf16.vlgmr.msrb.gmra.mxu2 %vm785_vm0, %v1306_v30 }
 0xab0   : >> { %v1331_v31 = vpop.f32.mrf.mxu2 }
 0xab1   : >> { %v1332_v32 = vadd.f32 %v1331_v31, %v2824_v16  ;;  %v1851_v16 = vld [vmem:[%s1405_s1 + $0x18] sm:$0xff]  ;;  %v1483_v31 = vperm.slane %v2818_v6, 2 }
 0xab2   : >> { %1451 = vmatpush.bf16.msrb.mxu1 %v1851_v16 }
 0xab3   : >> { %v1335_v33 = vsel %vm785_vm0, %v1332_v32, 0.0 }
 0xab4   : >> { %1336 = vadd.xlane.f32.xlu2 %v1335_v33  ;;  %v1485_v33 = vperm.slane %v2820_v10, 2 }
 0xab6   : >> { %1452 = vmatpush.bf16.msrb.mxu1 %v1850_v45 }
 0xab8   : >> { %v1333_v34 = vpop.f32.mrf.mxu2 }
 0xaba   : >> { %1453 = vmatpush.bf16.msrb.mxu1 %v1849_v59 }
 0xabe   : >> { %1454 = vmatpush.bf16.msrb.mxu1 %v1848_v60 }
 0xb27   : >> { %v1337_v35 = vpop.xlane.xlu2 %1336 }
 0xb28   : >> { %v1338_v36 = vmul.f32 %v1337_v35, %v2744_v17 }
 0xb2a   : >> { %v1339_v38 = vsub.f32 %v1332_v32, %v1338_v36 }
 0xb2c   : >> { %v1340_v39 = vmul.f32 %v1339_v38, %v1339_v38 }
 0xb2e   : >> { %v1341_v40 = vsel %vm785_vm0, %v1340_v39, 0.0 }
 0xb2f   : >> { %1342 = vadd.xlane.f32.xlu0 %v1341_v40 }
 0xba2   : >> { %v1343_v43 = vpop.xlane.xlu0 %1342 }
 0xba3   : >> { %v1344_v44 = vmul.f32 %v1343_v43, %v2744_v17 }
 0xba5   : >> { %v1345_v46 = vadd.f32 1e-06, %v1344_v44 }
 0xba7   : >> { %2023 = vrsqrt.f32 %v1345_v46  ;;  %vm1352_vm8 = vweird.f32 %v1345_v46 }
 0xbad   : >> { %v2024_v47 = vpop.eup %2023 }
 0xbae   : >> { %v1347_v48 = vmul.f32 %v2024_v47, %v1345_v46  ;;  %vm1353_vm7 = vweird.f32 %v2024_v47 }
 0xbaf   : >> { %vm1354_vm9 = vmor %vm1352_vm8, %vm1353_vm7 }
 0xbb0   : >> { %v1348_v49 = vmul.f32 %v2024_v47, %v1347_v48 }
 0xbb2   : >> { %v1349_v50 = vmul.f32 0.5, %v1348_v49 }
 0xbb4   : >> { %v1350_v51 = vsub.f32 1.5, %v1349_v50 }
 0xbb6   : >> { %v1351_v52 = vmul.f32 %v2024_v47, %v1350_v51 }
 0xbb8   : >> { %v1355_v54 = vsel %vm1354_vm9, %v2024_v47, %v1351_v52 }
 0xbb9   : >> { %v1356_v55 = vmul.f32 %v1355_v54, %v1339_v38 }
 0xbbb   : >> { %v1358_v57 = vmul.f32 %v1357_v53, %v1356_v55 }
 0xbbd   : >> { %v1360_v58 = vadd.f32 %v1359_v56, %v1358_v57 }
 0xbbf   : >> { %v1361_v37 = vpack.c.bf16 %v1360_v58, %v1360_v58 }
 0xbc1   : >> { %1805 = vmatmul.msk.bf16.vlgmr.msrb.gmra.mxu0 %vm785_vm0, %v1361_v37 }
 0xc3e   : >> { %v1397_v62 = vpop.f32.mrf.mxu0 }
 0xc3f   : >> { %v1398_v63 = vadd.f32 %v2003_v61, %v1397_v62 }
 0xc41   : >> { %v1401_v1 = vmax.f32 %v1398_v63, 0.0 }
 0xc43   : >> { %v1402_v2 = vpack.c.bf16 %v1401_v1, %v1401_v1 }
 0xc45   : >> { %1824 = vmatmul.msk.bf16.vlgmr.msrb.gmra.mxu1 %vm1443_vm2, %v1402_v2 }
 0xc46   : >> { %v1399_v4 = vpop.f32.mrf.mxu0 }
 0xcc2   : >> { %v1456_v9 = vpop.f32.mrf.mxu1 }
 0xcc3   : >> { %v1457_v11 = vadd.f32 %v2004_v5, %v1456_v9 }
 0xcc5   : >> { %v1460_v12 = vadd.f32 %v1457_v11, %v1360_v58 }
 0xcc7   : >> { %v1461_v13 = vsel %vm785_vm0, %v1460_v12, 0.0 }
 0xcc8   : >> { %1462 = vadd.xlane.f32.xlu1 %v1461_v13 }
 0xcca   : >> { %v1458_v14 = vpop.f32.mrf.mxu1 }
 0xd3b   : >> { %v1463_v15 = vpop.xlane.xlu1 %1462 }
 0xd3c   : >> { %v1464_v18 = vmul.f32 %v1463_v15, %v2744_v17 }
 0xd3e   : >> { %v1465_v19 = vsub.f32 %v1460_v12, %v1464_v18 }
 0xd40   : >> { %v1466_v20 = vmul.f32 %v1465_v19, %v1465_v19 }
 0xd42   : >> { %v1467_v21 = vsel %vm785_vm0, %v1466_v20, 0.0 }
 0xd43   : >> { %1468 = vadd.xlane.f32.xlu2 %v1467_v21 }
 0xdb6   : >> { %v1469_v22 = vpop.xlane.xlu2 %1468 }
 0xdb7   : >> { %v1470_v23 = vmul.f32 %v1469_v22, %v2744_v17 }
 0xdb9   : >> { %v1471_v24 = vadd.f32 1e-06, %v1470_v23 }
 0xdbb   : >> { %2025 = vrsqrt.f32 %v1471_v24  ;;  %vm1478_vm4 = vweird.f32 %v1471_v24 }
 0xdc1   : >> { %v2026_v25 = vpop.eup %2025 }
 0xdc2   : >> { %v1473_v26 = vmul.f32 %v2026_v25, %v1471_v24  ;;  %vm1479_vm3 = vweird.f32 %v2026_v25 }
 0xdc3   : >> { %vm1480_vm5 = vmor %vm1478_vm4, %vm1479_vm3 }
 0xdc4   : >> { %v1474_v27 = vmul.f32 %v2026_v25, %v1473_v26 }
 0xdc6   : >> { %v1475_v28 = vmul.f32 0.5, %v1474_v27 }
 0xdc8   : >> { %v1476_v29 = vsub.f32 1.5, %v1475_v28 }
 0xdca   : >> { %v1477_v30 = vmul.f32 %v2026_v25, %v1476_v29 }
 0xdcc   : >> { %v1481_v32 = vsel %vm1480_vm5, %v2026_v25, %v1477_v30 }
 0xdcd   : >> { %v1482_v34 = vmul.f32 %v1481_v32, %v1465_v19 }
 0xdcf   : >> { %v1484_v35 = vmul.f32 %v1483_v31, %v1482_v34  ;;  %835 = sbr.rel (!%p833_p7) target bundleno = 418 (0x1a2), region = 206 }
 0xdd1   : >> { %v1486_v36 = vadd.f32 %v1485_v33, %v1484_v35  }
 0xdd3   : >> { %v3009_v37 = vmov %v1486_v36  ;;  %1487 = vst.msk [vmem:[%s775_s27] sm:$0xff] (%p833_p7), %vm785_vm0, %v1486_v36 }
 0xdd4   : > { %2324 = shalt.err (!%p2321_p9)
}
 0xdd5   : > { %1882 = dma.vmem_to_hbm [thread:$0]  (%p2592_p0), %s1502_s21, 128, %s1504_s23, %s1489_s25  }
 0xdd6 PF: > { %s3012_s2 = sld [smem:[#allocation24_spill]] }
 0xdd7   : > { %s3014_s27 = sld [smem:[#allocation25_spill]] }
 0xddc   : > { %s1515_s19 = sand.u32 1, %s3012_s2  }
 0xddd   : > { %p3015_p2 = scmp.ge.s32.totalorder %s3014_s27, 2  ;;  %s1516_s7 = scalar_lea.sflag [#allocation4], %s1515_s19 }
 0xddf   : > { %p1914_p5 = pnand %p3015_p2, %p2598_p4 }
 0xde1   : > { %p1915_p1 = pneg %p1914_p5 }
 0xde3   : > { %2370 = dma.done.wait (%p1915_p1), %s1516_s7, 128  }
 0xde4   : > { %2372 = vsyncadd (%p1915_p1), %s1516_s7, 4294967168  ;;  %s3016_s30 = sld [smem:[#allocation26_spill]]  ;;  %s3018_s27 = smov %s2379_s28 }
 0xde5   : > { %s3017_s10 = sld [smem:[#allocation27_spill]]  ;;  %s3019_s28 = smov %s2383_s29 }
 0xdea   : > { %p37_p13 = scmp.ge.s32.totalorder %s3016_s30, 4  }
 0xdeb   : > { %s3020_s29 = smov %s3017_s10 }
 0xdec   :  { %39 = sbr.rel (!%p37_p13) target bundleno = 27 (0x1b), region = 217 }
 0xdf1   :  { %1522 = vsyncpa [#allocation3], 1 }
 0xdf2   :  { %1524 = vsyncpa [#allocation3 + $0x1], 1 }
 0xdf3   :  { %1525 = vsyncpa [#allocation6], 1 }
 0xdf4   :  { %1527 = vsyncpa [#allocation6 + $0x1], 1 }
 0xdf5   :  { %1528 = vsyncpa [#allocation9], 1 }
 0xdf6   :  { %1529 = vsyncpa [#allocation12], 1 }
 0xdf7   :  { %1530 = vsyncpa [#allocation15], 1 }
 0xdf8   :  { %1531 = vsyncpa [#allocation4], 1 }
 0xdf9   :  { %1533 = vsyncpa [#allocation4 + $0x1], 1 }

</bundles_post_ra>
